<compile_context>
chip_gen: v7x
topology: tpu7x:2x2x1
jax: 0.10.0
libtpu: 0.0.40
codegen_flags: <defaults>
</compile_context>

<pallas_src>
import math

import jax
import jax.numpy as jnp
from jax.experimental import pallas as pl
from jax.experimental.pallas import tpu as pltpu

BLOCK_SIZE = 128
NUM_BITS = 4
NUM_LEVELS = 2 ** NUM_BITS
FIXED_T = 100.0
EPS = 1e-6
STRIP = 8                               # one f32 vreg of rows per inner step
N_STRIPS = BLOCK_SIZE // STRIP

# quantization grid: linspace(0, 1, NUM_LEVELS) as Python float constants
_LEVELS = [l / (NUM_LEVELS - 1) for l in range(NUM_LEVELS)]


def _make_kernel(nbc, nsub):
    """Build the kernel for a weight with `nbc` 128-col blocks, `nsub` blocks
    processed per grid step."""

    def kernel(wmin_ref, wmax_ref, w_ref, out_ref, ent_ref):
        i = pl.program_id(0)
        j = pl.program_id(1)

        inv_total = 1.0 / (float(BLOCK_SIZE * BLOCK_SIZE) + EPS)
        ent_vec = jnp.zeros((1, BLOCK_SIZE), jnp.float32)   # sum_l bp*log(bp+eps)

        for sb in range(nsub):
            # ---- per-block learned clip parameters (scalars from SMEM) -----
            idx = i * nbc + j * nsub + sb
            wmin_p = wmin_ref[idx]
            wmax_p = wmax_ref[idx]
            w_min = jnp.minimum(wmin_p, wmax_p - EPS)        # clamp(max=w_max-eps)
            w_max = jnp.maximum(wmax_p, w_min + EPS)         # clamp(min=w_min+eps)
            rng = w_max - w_min
            inv_scale = 1.0 / (rng + EPS)
            col0 = sb * BLOCK_SIZE

            # ---- strip loop over (8,128) row strips of this 128x128 block --
            def strip_body(k, bm):
                r = pl.multiple_of(k * STRIP, STRIP)
                blk = w_ref[pl.ds(r, STRIP), pl.ds(col0, BLOCK_SIZE)]
                w_norm = (blk - w_min) * inv_scale
                # shift-invariance of softmax makes this exactly equivalent to
                # the reference for out-of-range values; avoids exp underflow.
                w_norm = jnp.clip(w_norm, 0.0, 1.0)

                # pass 1: e_l = exp(-T*|w_norm - lvl_l|), softmax denominator
                es = []
                s = None
                for l in range(NUM_LEVELS):
                    e = jnp.exp(jnp.abs(w_norm - _LEVELS[l]) * (-FIXED_T))
                    es.append(e)
                    s = e if s is None else s + e

                # EUP approximate reciprocal + one Newton step -> ~f32 exact
                r0 = pl.reciprocal(s, approx=True)
                inv_s = r0 * (2.0 - s * r0)

                # pass 2: probs, soft-quantized value, per-level bin mass
                num = None
                bm_out = []
                for l in range(NUM_LEVELS):
                    p = es[l] * inv_s
                    bm_out.append(bm[l] + p)
                    if l > 0:                                # level 0 adds 0
                        c = p * _LEVELS[l]
                        num = c if num is None else num + c

                out_ref[pl.ds(r, STRIP), pl.ds(col0, BLOCK_SIZE)] = (
                    num * rng + w_min
                ).astype(out_ref.dtype)
                return tuple(bm_out)

            bm0 = tuple(
                jnp.zeros((STRIP, BLOCK_SIZE), jnp.float32)
                for _ in range(NUM_LEVELS)
            )
            bm = jax.lax.fori_loop(0, N_STRIPS, strip_body, bm0)

            # ---- entropy contribution of this block (vectorized epilogue) --
            for l in range(NUM_LEVELS):
                col_mass = jnp.sum(bm[l], axis=0, keepdims=True)   # (1,128)
                bp = col_mass * inv_total
                ent_vec = ent_vec + bp * jnp.log(bp + EPS)

        step_entropy = -jnp.sum(ent_vec)        # single cross-lane reduce/step
        ent_ref[...] = jnp.zeros_like(ent_ref) + step_entropy

    return kernel


def _pad_shape(r, c):
    pr = math.ceil(r / BLOCK_SIZE) * BLOCK_SIZE
    pc = math.ceil(c / BLOCK_SIZE) * BLOCK_SIZE
    return pr, pc


def init_params(weight):
    """Deterministic parameter init, same as the module __init__."""
    r, c = weight.shape
    pr, pc = _pad_shape(r, c)
    padded = jnp.zeros((pr, pc), jnp.float32).at[:r, :c].set(weight)
    nbr, nbc = pr // BLOCK_SIZE, pc // BLOCK_SIZE
    blocks = padded.reshape(nbr, BLOCK_SIZE, nbc, BLOCK_SIZE).transpose(0, 2, 1, 3)
    bmin = blocks.min(axis=(2, 3)).reshape(-1)           # row-major block order
    bmax = blocks.max(axis=(2, 3)).reshape(-1)
    pad = 0.01 * (bmax - bmin)
    return (bmin + pad).astype(jnp.float32), (bmax - pad).astype(jnp.float32)


def blockwise_quant_forward(weight, w_min_params, w_max_params):
    r, c = weight.shape
    pr, pc = _pad_shape(r, c)
    padded = jnp.zeros((pr, pc), jnp.float32).at[:r, :c].set(weight)
    nbr, nbc = pr // BLOCK_SIZE, pc // BLOCK_SIZE

    # largest divisor of nbc that is <= 8: number of 128x128 quantization
    # blocks handled per grid step (amortizes per-step overhead).
    nsub = 1
    for d in range(min(8, nbc), 0, -1):
        if nbc % d == 0:
            nsub = d
            break
    ngc = nbc // nsub

    kernel = _make_kernel(nbc, nsub)

    deq_padded, ent_blocks = pl.pallas_call(
        kernel,
        out_shape=(
            jax.ShapeDtypeStruct((pr, pc), jnp.float32),
            # per-(i,j) entropy, lane-dense (8,128) block per grid point
            jax.ShapeDtypeStruct((8 * nbr, 128 * ngc), jnp.float32),
        ),
        grid=(nbr, ngc),
        in_specs=[
            pl.BlockSpec(memory_space=pltpu.MemorySpace.SMEM),   # w_min params
            pl.BlockSpec(memory_space=pltpu.MemorySpace.SMEM),   # w_max params
            pl.BlockSpec((BLOCK_SIZE, nsub * BLOCK_SIZE), lambda i, j: (i, j)),
        ],
        out_specs=(
            pl.BlockSpec((BLOCK_SIZE, nsub * BLOCK_SIZE), lambda i, j: (i, j)),
            pl.BlockSpec((8, 128), lambda i, j: (i, j)),
        ),
        compiler_params=pltpu.CompilerParams(
            dimension_semantics=("parallel", "parallel")         # full megacore
        ),
    )(w_min_params, w_max_params, padded)

    # each (8,128) entropy block is a broadcast of that grid step's entropy sum
    total_entropy = jnp.sum(ent_blocks[::8, ::128])
    return deq_padded[:r, :c], total_entropy


def reference_forward(weight, w_min_params, w_max_params):
    """Pure-JAX reference mirroring the PyTorch forward, for sanity checking."""
    r, c = weight.shape
    pr, pc = _pad_shape(r, c)
    padded = jnp.zeros((pr, pc), jnp.float32).at[:r, :c].set(weight)
    nbr, nbc = pr // BLOCK_SIZE, pc // BLOCK_SIZE
    blocks = padded.reshape(nbr, BLOCK_SIZE, nbc, BLOCK_SIZE).transpose(0, 2, 1, 3)
    blocks = blocks.reshape(-1, BLOCK_SIZE, BLOCK_SIZE)

    w_min = jnp.minimum(w_min_params, w_max_params - EPS)
    w_max = jnp.maximum(w_max_params, w_min + EPS)
    levels = jnp.linspace(0.0, 1.0, NUM_LEVELS)

    w_norm = (blocks - w_min[:, None, None]) / (w_max - w_min + EPS)[:, None, None]
    dists = -jnp.abs(w_norm[..., None] - levels)
    probs = jax.nn.softmax(dists * FIXED_T, axis=-1)
    w_q = (probs * levels).sum(-1)
    w_deq = w_q * (w_max - w_min)[:, None, None] + w_min[:, None, None]

    bin_mass = probs.sum(axis=1)                          # (nb, BS, L)
    bin_probs = bin_mass / (bin_mass.sum(axis=(1, 2), keepdims=True) + EPS)
    entropy = -(bin_probs * jnp.log(bin_probs + EPS)).sum()

    out = w_deq.reshape(nbr, nbc, BLOCK_SIZE, BLOCK_SIZE).transpose(0, 2, 1, 3)
    out = out.reshape(pr, pc)
    return out[:r, :c], entropy


if __name__ == "__main__":
    key = jax.random.PRNGKey(0)
    # small weight matrix -> padded to (128, 256): 1x2 grid of 128x128 blocks,
    # processed as a single (128, 256) grid step (nsub=2).
    weight = jax.random.normal(key, (100, 200), dtype=jnp.float32)

    w_min_p, w_max_p = init_params(weight)

    deq, entropy = blockwise_quant_forward(weight, w_min_p, w_max_p)
    jax.block_until_ready((deq, entropy))

    # sanity check against the pure-JAX reference
    deq_ref, ent_ref = reference_forward(weight, w_min_p, w_max_p)
    assert deq.shape == weight.shape
    assert jnp.allclose(deq, deq_ref, atol=2e-3, rtol=2e-3), "dequant mismatch"
    assert jnp.allclose(entropy, ent_ref, atol=2e-3, rtol=2e-3), "entropy mismatch"

    print("KERNEL_OK")
</pallas_src>

<mosaic_0001>
module attributes {stable_mosaic.version = 11 : i64} {
  func.func @kernel(%arg0: i32, %arg1: i32, %arg2: memref<2xf32, #tpu.memory_space<smem>>, %arg3: memref<2xf32, #tpu.memory_space<smem>>, %arg4: memref<128x256xf32, #tpu.memory_space<vmem>>, %arg5: memref<128x256xf32, #tpu.memory_space<vmem>>, %arg6: memref<8x128xf32, #tpu.memory_space<vmem>>) attributes {dimension_semantics = [#tpu.dimension_semantics<parallel>, #tpu.dimension_semantics<parallel>], iteration_bounds = array<i64: 1, 1>, scalar_prefetch = 0 : i64, scratch_operands = 0 : i64, tpu.core_type = #tpu.core_type<tc>, window_params = [{transform_indices = @transform_0, window_bounds = array<i64: 2>}, {transform_indices = @transform_1, window_bounds = array<i64: 2>}, {transform_indices = @transform_2, window_bounds = array<i64: 128, 256>}, {transform_indices = @transform_3, window_bounds = array<i64: 128, 256>}, {transform_indices = @transform_4, window_bounds = array<i64: 8, 128>}]} {
    %cst = arith.constant 0.000000e+00 : f32
    %0 = vector.broadcast %cst : f32 to vector<1x128xf32>
    %c2_i32 = arith.constant 2 : i32
    %1 = arith.muli %arg0, %c2_i32 : i32
    %c2_i32_0 = arith.constant 2 : i32
    %2 = arith.muli %arg1, %c2_i32_0 : i32
    %3 = arith.addi %1, %2 : i32
    %c0_i32 = arith.constant 0 : i32
    %4 = arith.addi %3, %c0_i32 : i32
    %5 = arith.index_cast %4 : i32 to index
    %6 = memref.load %arg2[%5] : memref<2xf32, #tpu.memory_space<smem>>
    %7 = arith.index_cast %4 : i32 to index
    %8 = memref.load %arg3[%7] : memref<2xf32, #tpu.memory_space<smem>>
    %cst_1 = arith.constant 9.99999997E-7 : f32
    %9 = arith.subf %8, %cst_1 : f32
    %10 = arith.minimumf %6, %9 : f32
    %cst_2 = arith.constant 9.99999997E-7 : f32
    %11 = arith.addf %10, %cst_2 : f32
    %12 = arith.maximumf %8, %11 : f32
    %13 = arith.subf %12, %10 : f32
    %cst_3 = arith.constant 9.99999997E-7 : f32
    %14 = arith.addf %13, %cst_3 : f32
    %cst_4 = arith.constant 1.000000e+00 : f32
    %15 = arith.divf %cst_4, %14 : f32
    %cst_5 = arith.constant 0.000000e+00 : f32
    %16 = vector.broadcast %cst_5 : f32 to vector<8x128xf32>
    %cst_6 = arith.constant 0.000000e+00 : f32
    %17 = vector.broadcast %cst_6 : f32 to vector<8x128xf32>
    %cst_7 = arith.constant 0.000000e+00 : f32
    %18 = vector.broadcast %cst_7 : f32 to vector<8x128xf32>
    %cst_8 = arith.constant 0.000000e+00 : f32
    %19 = vector.broadcast %cst_8 : f32 to vector<8x128xf32>
    %cst_9 = arith.constant 0.000000e+00 : f32
    %20 = vector.broadcast %cst_9 : f32 to vector<8x128xf32>
    %cst_10 = arith.constant 0.000000e+00 : f32
    %21 = vector.broadcast %cst_10 : f32 to vector<8x128xf32>
    %cst_11 = arith.constant 0.000000e+00 : f32
    %22 = vector.broadcast %cst_11 : f32 to vector<8x128xf32>
    %cst_12 = arith.constant 0.000000e+00 : f32
    %23 = vector.broadcast %cst_12 : f32 to vector<8x128xf32>
    %cst_13 = arith.constant 0.000000e+00 : f32
    %24 = vector.broadcast %cst_13 : f32 to vector<8x128xf32>
    %cst_14 = arith.constant 0.000000e+00 : f32
    %25 = vector.broadcast %cst_14 : f32 to vector<8x128xf32>
    %cst_15 = arith.constant 0.000000e+00 : f32
    %26 = vector.broadcast %cst_15 : f32 to vector<8x128xf32>
    %cst_16 = arith.constant 0.000000e+00 : f32
    %27 = vector.broadcast %cst_16 : f32 to vector<8x128xf32>
    %cst_17 = arith.constant 0.000000e+00 : f32
    %28 = vector.broadcast %cst_17 : f32 to vector<8x128xf32>
    %cst_18 = arith.constant 0.000000e+00 : f32
    %29 = vector.broadcast %cst_18 : f32 to vector<8x128xf32>
    %cst_19 = arith.constant 0.000000e+00 : f32
    %30 = vector.broadcast %cst_19 : f32 to vector<8x128xf32>
    %cst_20 = arith.constant 0.000000e+00 : f32
    %31 = vector.broadcast %cst_20 : f32 to vector<8x128xf32>
    %c0_i32_21 = arith.constant 0 : i32
    %c16_i32 = arith.constant 16 : i32
    %32 = arith.addi %c0_i32_21, %c16_i32 : i32
    %c1_i32 = arith.constant 1 : i32
    %33:16 = scf.for %arg7 = %c0_i32_21 to %32 step %c1_i32 iter_args(%arg8 = %16, %arg9 = %17, %arg10 = %18, %arg11 = %19, %arg12 = %20, %arg13 = %21, %arg14 = %22, %arg15 = %23, %arg16 = %24, %arg17 = %25, %arg18 = %26, %arg19 = %27, %arg20 = %28, %arg21 = %29, %arg22 = %30, %arg23 = %31) -> (vector<8x128xf32>, vector<8x128xf32>, vector<8x128xf32>, vector<8x128xf32>, vector<8x128xf32>, vector<8x128xf32>, vector<8x128xf32>, vector<8x128xf32>, vector<8x128xf32>, vector<8x128xf32>, vector<8x128xf32>, vector<8x128xf32>, vector<8x128xf32>, vector<8x128xf32>, vector<8x128xf32>, vector<8x128xf32>)  : i32 {
      %c8_i32 = arith.constant 8 : i32
      %364 = arith.muli %arg7, %c8_i32 : i32
      %365 = tpu.assume_multiple %364, 8 : i32
      %366 = arith.index_cast %365 : i32 to index
      %c0_150 = arith.constant 0 : index
      %367 = vector.load %arg4[%366, %c0_150] : memref<128x256xf32, #tpu.memory_space<vmem>>, vector<8x128xf32>
      %368 = vector.broadcast %10 : f32 to vector<8x128xf32>
      %369 = arith.subf %367, %368 : vector<8x128xf32>
      %370 = vector.broadcast %15 : f32 to vector<8x128xf32>
      %371 = arith.mulf %369, %370 : vector<8x128xf32>
      %cst_151 = arith.constant 0.000000e+00 : f32
      %cst_152 = arith.constant 1.000000e+00 : f32
      %372 = vector.broadcast %cst_151 : f32 to vector<8x128xf32>
      %373 = arith.maximumf %372, %371 : vector<8x128xf32>
      %374 = vector.broadcast %cst_152 : f32 to vector<8x128xf32>
      %375 = arith.minimumf %374, %373 : vector<8x128xf32>
      %cst_153 = arith.constant 0.000000e+00 : f32
      %376 = vector.broadcast %cst_153 : f32 to vector<8x128xf32>
      %377 = arith.subf %375, %376 : vector<8x128xf32>
      %378 = math.absf %377 : vector<8x128xf32>
      %cst_154 = arith.constant -1.000000e+02 : f32
      %379 = vector.broadcast %cst_154 : f32 to vector<8x128xf32>
      %380 = arith.mulf %378, %379 : vector<8x128xf32>
      %381 = math.exp %380 : vector<8x128xf32>
      %cst_155 = arith.constant 0.0666666701 : f32
      %382 = vector.broadcast %cst_155 : f32 to vector<8x128xf32>
      %383 = arith.subf %375, %382 : vector<8x128xf32>
      %384 = math.absf %383 : vector<8x128xf32>
      %cst_156 = arith.constant -1.000000e+02 : f32
      %385 = vector.broadcast %cst_156 : f32 to vector<8x128xf32>
      %386 = arith.mulf %384, %385 : vector<8x128xf32>
      %387 = math.exp %386 : vector<8x128xf32>
      %388 = arith.addf %381, %387 : vector<8x128xf32>
      %cst_157 = arith.constant 0.13333334 : f32
      %389 = vector.broadcast %cst_157 : f32 to vector<8x128xf32>
      %390 = arith.subf %375, %389 : vector<8x128xf32>
      %391 = math.absf %390 : vector<8x128xf32>
      %cst_158 = arith.constant -1.000000e+02 : f32
      %392 = vector.broadcast %cst_158 : f32 to vector<8x128xf32>
      %393 = arith.mulf %391, %392 : vector<8x128xf32>
      %394 = math.exp %393 : vector<8x128xf32>
      %395 = arith.addf %388, %394 : vector<8x128xf32>
      %cst_159 = arith.constant 2.000000e-01 : f32
      %396 = vector.broadcast %cst_159 : f32 to vector<8x128xf32>
      %397 = arith.subf %375, %396 : vector<8x128xf32>
      %398 = math.absf %397 : vector<8x128xf32>
      %cst_160 = arith.constant -1.000000e+02 : f32
      %399 = vector.broadcast %cst_160 : f32 to vector<8x128xf32>
      %400 = arith.mulf %398, %399 : vector<8x128xf32>
      %401 = math.exp %400 : vector<8x128xf32>
      %402 = arith.addf %395, %401 : vector<8x128xf32>
      %cst_161 = arith.constant 0.266666681 : f32
      %403 = vector.broadcast %cst_161 : f32 to vector<8x128xf32>
      %404 = arith.subf %375, %403 : vector<8x128xf32>
      %405 = math.absf %404 : vector<8x128xf32>
      %cst_162 = arith.constant -1.000000e+02 : f32
      %406 = vector.broadcast %cst_162 : f32 to vector<8x128xf32>
      %407 = arith.mulf %405, %406 : vector<8x128xf32>
      %408 = math.exp %407 : vector<8x128xf32>
      %409 = arith.addf %402, %408 : vector<8x128xf32>
      %cst_163 = arith.constant 0.333333343 : f32
      %410 = vector.broadcast %cst_163 : f32 to vector<8x128xf32>
      %411 = arith.subf %375, %410 : vector<8x128xf32>
      %412 = math.absf %411 : vector<8x128xf32>
      %cst_164 = arith.constant -1.000000e+02 : f32
      %413 = vector.broadcast %cst_164 : f32 to vector<8x128xf32>
      %414 = arith.mulf %412, %413 : vector<8x128xf32>
      %415 = math.exp %414 : vector<8x128xf32>
      %416 = arith.addf %409, %415 : vector<8x128xf32>
      %cst_165 = arith.constant 4.000000e-01 : f32
      %417 = vector.broadcast %cst_165 : f32 to vector<8x128xf32>
      %418 = arith.subf %375, %417 : vector<8x128xf32>
      %419 = math.absf %418 : vector<8x128xf32>
      %cst_166 = arith.constant -1.000000e+02 : f32
      %420 = vector.broadcast %cst_166 : f32 to vector<8x128xf32>
      %421 = arith.mulf %419, %420 : vector<8x128xf32>
      %422 = math.exp %421 : vector<8x128xf32>
      %423 = arith.addf %416, %422 : vector<8x128xf32>
      %cst_167 = arith.constant 0.466666669 : f32
      %424 = vector.broadcast %cst_167 : f32 to vector<8x128xf32>
      %425 = arith.subf %375, %424 : vector<8x128xf32>
      %426 = math.absf %425 : vector<8x128xf32>
      %cst_168 = arith.constant -1.000000e+02 : f32
      %427 = vector.broadcast %cst_168 : f32 to vector<8x128xf32>
      %428 = arith.mulf %426, %427 : vector<8x128xf32>
      %429 = math.exp %428 : vector<8x128xf32>
      %430 = arith.addf %423, %429 : vector<8x128xf32>
      %cst_169 = arith.constant 0.533333361 : f32
      %431 = vector.broadcast %cst_169 : f32 to vector<8x128xf32>
      %432 = arith.subf %375, %431 : vector<8x128xf32>
      %433 = math.absf %432 : vector<8x128xf32>
      %cst_170 = arith.constant -1.000000e+02 : f32
      %434 = vector.broadcast %cst_170 : f32 to vector<8x128xf32>
      %435 = arith.mulf %433, %434 : vector<8x128xf32>
      %436 = math.exp %435 : vector<8x128xf32>
      %437 = arith.addf %430, %436 : vector<8x128xf32>
      %cst_171 = arith.constant 6.000000e-01 : f32
      %438 = vector.broadcast %cst_171 : f32 to vector<8x128xf32>
      %439 = arith.subf %375, %438 : vector<8x128xf32>
      %440 = math.absf %439 : vector<8x128xf32>
      %cst_172 = arith.constant -1.000000e+02 : f32
      %441 = vector.broadcast %cst_172 : f32 to vector<8x128xf32>
      %442 = arith.mulf %440, %441 : vector<8x128xf32>
      %443 = math.exp %442 : vector<8x128xf32>
      %444 = arith.addf %437, %443 : vector<8x128xf32>
      %cst_173 = arith.constant 0.666666686 : f32
      %445 = vector.broadcast %cst_173 : f32 to vector<8x128xf32>
      %446 = arith.subf %375, %445 : vector<8x128xf32>
      %447 = math.absf %446 : vector<8x128xf32>
      %cst_174 = arith.constant -1.000000e+02 : f32
      %448 = vector.broadcast %cst_174 : f32 to vector<8x128xf32>
      %449 = arith.mulf %447, %448 : vector<8x128xf32>
      %450 = math.exp %449 : vector<8x128xf32>
      %451 = arith.addf %444, %450 : vector<8x128xf32>
      %cst_175 = arith.constant 0.733333349 : f32
      %452 = vector.broadcast %cst_175 : f32 to vector<8x128xf32>
      %453 = arith.subf %375, %452 : vector<8x128xf32>
      %454 = math.absf %453 : vector<8x128xf32>
      %cst_176 = arith.constant -1.000000e+02 : f32
      %455 = vector.broadcast %cst_176 : f32 to vector<8x128xf32>
      %456 = arith.mulf %454, %455 : vector<8x128xf32>
      %457 = math.exp %456 : vector<8x128xf32>
      %458 = arith.addf %451, %457 : vector<8x128xf32>
      %cst_177 = arith.constant 8.000000e-01 : f32
      %459 = vector.broadcast %cst_177 : f32 to vector<8x128xf32>
      %460 = arith.subf %375, %459 : vector<8x128xf32>
      %461 = math.absf %460 : vector<8x128xf32>
      %cst_178 = arith.constant -1.000000e+02 : f32
      %462 = vector.broadcast %cst_178 : f32 to vector<8x128xf32>
      %463 = arith.mulf %461, %462 : vector<8x128xf32>
      %464 = math.exp %463 : vector<8x128xf32>
      %465 = arith.addf %458, %464 : vector<8x128xf32>
      %cst_179 = arith.constant 0.866666674 : f32
      %466 = vector.broadcast %cst_179 : f32 to vector<8x128xf32>
      %467 = arith.subf %375, %466 : vector<8x128xf32>
      %468 = math.absf %467 : vector<8x128xf32>
      %cst_180 = arith.constant -1.000000e+02 : f32
      %469 = vector.broadcast %cst_180 : f32 to vector<8x128xf32>
      %470 = arith.mulf %468, %469 : vector<8x128xf32>
      %471 = math.exp %470 : vector<8x128xf32>
      %472 = arith.addf %465, %471 : vector<8x128xf32>
      %cst_181 = arith.constant 0.933333337 : f32
      %473 = vector.broadcast %cst_181 : f32 to vector<8x128xf32>
      %474 = arith.subf %375, %473 : vector<8x128xf32>
      %475 = math.absf %474 : vector<8x128xf32>
      %cst_182 = arith.constant -1.000000e+02 : f32
      %476 = vector.broadcast %cst_182 : f32 to vector<8x128xf32>
      %477 = arith.mulf %475, %476 : vector<8x128xf32>
      %478 = math.exp %477 : vector<8x128xf32>
      %479 = arith.addf %472, %478 : vector<8x128xf32>
      %cst_183 = arith.constant 1.000000e+00 : f32
      %480 = vector.broadcast %cst_183 : f32 to vector<8x128xf32>
      %481 = arith.subf %375, %480 : vector<8x128xf32>
      %482 = math.absf %481 : vector<8x128xf32>
      %cst_184 = arith.constant -1.000000e+02 : f32
      %483 = vector.broadcast %cst_184 : f32 to vector<8x128xf32>
      %484 = arith.mulf %482, %483 : vector<8x128xf32>
      %485 = math.exp %484 : vector<8x128xf32>
      %486 = arith.addf %479, %485 : vector<8x128xf32>
      %487 = tpu.reciprocal %486 {approx = true} : vector<8x128xf32> -> vector<8x128xf32>
      %488 = arith.mulf %486, %487 : vector<8x128xf32>
      %cst_185 = arith.constant 2.000000e+00 : f32
      %489 = vector.broadcast %cst_185 : f32 to vector<8x128xf32>
      %490 = arith.subf %489, %488 : vector<8x128xf32>
      %491 = arith.mulf %487, %490 : vector<8x128xf32>
      %492 = arith.mulf %381, %491 : vector<8x128xf32>
      %493 = arith.addf %arg8, %492 : vector<8x128xf32>
      %494 = arith.mulf %387, %491 : vector<8x128xf32>
      %495 = arith.addf %arg9, %494 : vector<8x128xf32>
      %cst_186 = arith.constant 0.0666666701 : f32
      %496 = vector.broadcast %cst_186 : f32 to vector<8x128xf32>
      %497 = arith.mulf %494, %496 : vector<8x128xf32>
      %498 = arith.mulf %394, %491 : vector<8x128xf32>
      %499 = arith.addf %arg10, %498 : vector<8x128xf32>
      %cst_187 = arith.constant 0.13333334 : f32
      %500 = vector.broadcast %cst_187 : f32 to vector<8x128xf32>
      %501 = arith.mulf %498, %500 : vector<8x128xf32>
      %502 = arith.addf %497, %501 : vector<8x128xf32>
      %503 = arith.mulf %401, %491 : vector<8x128xf32>
      %504 = arith.addf %arg11, %503 : vector<8x128xf32>
      %cst_188 = arith.constant 2.000000e-01 : f32
      %505 = vector.broadcast %cst_188 : f32 to vector<8x128xf32>
      %506 = arith.mulf %503, %505 : vector<8x128xf32>
      %507 = arith.addf %502, %506 : vector<8x128xf32>
      %508 = arith.mulf %408, %491 : vector<8x128xf32>
      %509 = arith.addf %arg12, %508 : vector<8x128xf32>
      %cst_189 = arith.constant 0.266666681 : f32
      %510 = vector.broadcast %cst_189 : f32 to vector<8x128xf32>
      %511 = arith.mulf %508, %510 : vector<8x128xf32>
      %512 = arith.addf %507, %511 : vector<8x128xf32>
      %513 = arith.mulf %415, %491 : vector<8x128xf32>
      %514 = arith.addf %arg13, %513 : vector<8x128xf32>
      %cst_190 = arith.constant 0.333333343 : f32
      %515 = vector.broadcast %cst_190 : f32 to vector<8x128xf32>
      %516 = arith.mulf %513, %515 : vector<8x128xf32>
      %517 = arith.addf %512, %516 : vector<8x128xf32>
      %518 = arith.mulf %422, %491 : vector<8x128xf32>
      %519 = arith.addf %arg14, %518 : vector<8x128xf32>
      %cst_191 = arith.constant 4.000000e-01 : f32
      %520 = vector.broadcast %cst_191 : f32 to vector<8x128xf32>
      %521 = arith.mulf %518, %520 : vector<8x128xf32>
      %522 = arith.addf %517, %521 : vector<8x128xf32>
      %523 = arith.mulf %429, %491 : vector<8x128xf32>
      %524 = arith.addf %arg15, %523 : vector<8x128xf32>
      %cst_192 = arith.constant 0.466666669 : f32
      %525 = vector.broadcast %cst_192 : f32 to vector<8x128xf32>
      %526 = arith.mulf %523, %525 : vector<8x128xf32>
      %527 = arith.addf %522, %526 : vector<8x128xf32>
      %528 = arith.mulf %436, %491 : vector<8x128xf32>
      %529 = arith.addf %arg16, %528 : vector<8x128xf32>
      %cst_193 = arith.constant 0.533333361 : f32
      %530 = vector.broadcast %cst_193 : f32 to vector<8x128xf32>
      %531 = arith.mulf %528, %530 : vector<8x128xf32>
      %532 = arith.addf %527, %531 : vector<8x128xf32>
      %533 = arith.mulf %443, %491 : vector<8x128xf32>
      %534 = arith.addf %arg17, %533 : vector<8x128xf32>
      %cst_194 = arith.constant 6.000000e-01 : f32
      %535 = vector.broadcast %cst_194 : f32 to vector<8x128xf32>
      %536 = arith.mulf %533, %535 : vector<8x128xf32>
      %537 = arith.addf %532, %536 : vector<8x128xf32>
      %538 = arith.mulf %450, %491 : vector<8x128xf32>
      %539 = arith.addf %arg18, %538 : vector<8x128xf32>
      %cst_195 = arith.constant 0.666666686 : f32
      %540 = vector.broadcast %cst_195 : f32 to vector<8x128xf32>
      %541 = arith.mulf %538, %540 : vector<8x128xf32>
      %542 = arith.addf %537, %541 : vector<8x128xf32>
      %543 = arith.mulf %457, %491 : vector<8x128xf32>
      %544 = arith.addf %arg19, %543 : vector<8x128xf32>
      %cst_196 = arith.constant 0.733333349 : f32
      %545 = vector.broadcast %cst_196 : f32 to vector<8x128xf32>
      %546 = arith.mulf %543, %545 : vector<8x128xf32>
      %547 = arith.addf %542, %546 : vector<8x128xf32>
      %548 = arith.mulf %464, %491 : vector<8x128xf32>
      %549 = arith.addf %arg20, %548 : vector<8x128xf32>
      %cst_197 = arith.constant 8.000000e-01 : f32
      %550 = vector.broadcast %cst_197 : f32 to vector<8x128xf32>
      %551 = arith.mulf %548, %550 : vector<8x128xf32>
      %552 = arith.addf %547, %551 : vector<8x128xf32>
      %553 = arith.mulf %471, %491 : vector<8x128xf32>
      %554 = arith.addf %arg21, %553 : vector<8x128xf32>
      %cst_198 = arith.constant 0.866666674 : f32
      %555 = vector.broadcast %cst_198 : f32 to vector<8x128xf32>
      %556 = arith.mulf %553, %555 : vector<8x128xf32>
      %557 = arith.addf %552, %556 : vector<8x128xf32>
      %558 = arith.mulf %478, %491 : vector<8x128xf32>
      %559 = arith.addf %arg22, %558 : vector<8x128xf32>
      %cst_199 = arith.constant 0.933333337 : f32
      %560 = vector.broadcast %cst_199 : f32 to vector<8x128xf32>
      %561 = arith.mulf %558, %560 : vector<8x128xf32>
      %562 = arith.addf %557, %561 : vector<8x128xf32>
      %563 = arith.mulf %485, %491 : vector<8x128xf32>
      %564 = arith.addf %arg23, %563 : vector<8x128xf32>
      %cst_200 = arith.constant 1.000000e+00 : f32
      %565 = vector.broadcast %cst_200 : f32 to vector<8x128xf32>
      %566 = arith.mulf %563, %565 : vector<8x128xf32>
      %567 = arith.addf %562, %566 : vector<8x128xf32>
      %568 = vector.broadcast %13 : f32 to vector<8x128xf32>
      %569 = arith.mulf %567, %568 : vector<8x128xf32>
      %570 = vector.broadcast %10 : f32 to vector<8x128xf32>
      %571 = arith.addf %569, %570 : vector<8x128xf32>
      %572 = arith.index_cast %365 : i32 to index
      %c0_201 = arith.constant 0 : index
      %573 = vector.load %arg5[%572, %c0_201] : memref<128x256xf32, #tpu.memory_space<vmem>>, vector<8x128xf32>
      tpu.vector_store %arg5[%572, %c0_201], %571 {strides = array<i32>} : memref<128x256xf32, #tpu.memory_space<vmem>>, vector<8x128xf32>,
      scf.yield %493, %495, %499, %504, %509, %514, %519, %524, %529, %534, %539, %544, %549, %554, %559, %564 : vector<8x128xf32>, vector<8x128xf32>, vector<8x128xf32>, vector<8x128xf32>, vector<8x128xf32>, vector<8x128xf32>, vector<8x128xf32>, vector<8x128xf32>, vector<8x128xf32>, vector<8x128xf32>, vector<8x128xf32>, vector<8x128xf32>, vector<8x128xf32>, vector<8x128xf32>, vector<8x128xf32>, vector<8x128xf32>
    }
    %c16_i32_22 = arith.constant 16 : i32
    %cst_23 = arith.constant dense<0.000000e+00> : vector<128xf32>
    %34 = vector.multi_reduction <add>, %33#0, %cst_23 [0] : vector<8x128xf32> to vector<128xf32>
    %35 = vector.shape_cast %34 : vector<128xf32> to vector<1x128xf32>
    %cst_24 = arith.constant 6.10351563E-5 : f32
    %36 = vector.broadcast %cst_24 : f32 to vector<1x128xf32>
    %37 = arith.mulf %35, %36 : vector<1x128xf32>
    %cst_25 = arith.constant 9.99999997E-7 : f32
    %38 = vector.broadcast %cst_25 : f32 to vector<1x128xf32>
    %39 = arith.addf %37, %38 : vector<1x128xf32>
    %40 = math.log %39 : vector<1x128xf32>
    %41 = arith.mulf %37, %40 : vector<1x128xf32>
    %42 = arith.addf %0, %41 : vector<1x128xf32>
    %cst_26 = arith.constant dense<0.000000e+00> : vector<128xf32>
    %43 = vector.multi_reduction <add>, %33#1, %cst_26 [0] : vector<8x128xf32> to vector<128xf32>
    %44 = vector.shape_cast %43 : vector<128xf32> to vector<1x128xf32>
    %cst_27 = arith.constant 6.10351563E-5 : f32
    %45 = vector.broadcast %cst_27 : f32 to vector<1x128xf32>
    %46 = arith.mulf %44, %45 : vector<1x128xf32>
    %cst_28 = arith.constant 9.99999997E-7 : f32
    %47 = vector.broadcast %cst_28 : f32 to vector<1x128xf32>
    %48 = arith.addf %46, %47 : vector<1x128xf32>
    %49 = math.log %48 : vector<1x128xf32>
    %50 = arith.mulf %46, %49 : vector<1x128xf32>
    %51 = arith.addf %42, %50 : vector<1x128xf32>
    %cst_29 = arith.constant dense<0.000000e+00> : vector<128xf32>
    %52 = vector.multi_reduction <add>, %33#2, %cst_29 [0] : vector<8x128xf32> to vector<128xf32>
    %53 = vector.shape_cast %52 : vector<128xf32> to vector<1x128xf32>
    %cst_30 = arith.constant 6.10351563E-5 : f32
    %54 = vector.broadcast %cst_30 : f32 to vector<1x128xf32>
    %55 = arith.mulf %53, %54 : vector<1x128xf32>
    %cst_31 = arith.constant 9.99999997E-7 : f32
    %56 = vector.broadcast %cst_31 : f32 to vector<1x128xf32>
    %57 = arith.addf %55, %56 : vector<1x128xf32>
    %58 = math.log %57 : vector<1x128xf32>
    %59 = arith.mulf %55, %58 : vector<1x128xf32>
    %60 = arith.addf %51, %59 : vector<1x128xf32>
    %cst_32 = arith.constant dense<0.000000e+00> : vector<128xf32>
    %61 = vector.multi_reduction <add>, %33#3, %cst_32 [0] : vector<8x128xf32> to vector<128xf32>
    %62 = vector.shape_cast %61 : vector<128xf32> to vector<1x128xf32>
    %cst_33 = arith.constant 6.10351563E-5 : f32
    %63 = vector.broadcast %cst_33 : f32 to vector<1x128xf32>
    %64 = arith.mulf %62, %63 : vector<1x128xf32>
    %cst_34 = arith.constant 9.99999997E-7 : f32
    %65 = vector.broadcast %cst_34 : f32 to vector<1x128xf32>
    %66 = arith.addf %64, %65 : vector<1x128xf32>
    %67 = math.log %66 : vector<1x128xf32>
    %68 = arith.mulf %64, %67 : vector<1x128xf32>
    %69 = arith.addf %60, %68 : vector<1x128xf32>
    %cst_35 = arith.constant dense<0.000000e+00> : vector<128xf32>
    %70 = vector.multi_reduction <add>, %33#4, %cst_35 [0] : vector<8x128xf32> to vector<128xf32>
    %71 = vector.shape_cast %70 : vector<128xf32> to vector<1x128xf32>
    %cst_36 = arith.constant 6.10351563E-5 : f32
    %72 = vector.broadcast %cst_36 : f32 to vector<1x128xf32>
    %73 = arith.mulf %71, %72 : vector<1x128xf32>
    %cst_37 = arith.constant 9.99999997E-7 : f32
    %74 = vector.broadcast %cst_37 : f32 to vector<1x128xf32>
    %75 = arith.addf %73, %74 : vector<1x128xf32>
    %76 = math.log %75 : vector<1x128xf32>
    %77 = arith.mulf %73, %76 : vector<1x128xf32>
    %78 = arith.addf %69, %77 : vector<1x128xf32>
    %cst_38 = arith.constant dense<0.000000e+00> : vector<128xf32>
    %79 = vector.multi_reduction <add>, %33#5, %cst_38 [0] : vector<8x128xf32> to vector<128xf32>
    %80 = vector.shape_cast %79 : vector<128xf32> to vector<1x128xf32>
    %cst_39 = arith.constant 6.10351563E-5 : f32
    %81 = vector.broadcast %cst_39 : f32 to vector<1x128xf32>
    %82 = arith.mulf %80, %81 : vector<1x128xf32>
    %cst_40 = arith.constant 9.99999997E-7 : f32
    %83 = vector.broadcast %cst_40 : f32 to vector<1x128xf32>
    %84 = arith.addf %82, %83 : vector<1x128xf32>
    %85 = math.log %84 : vector<1x128xf32>
    %86 = arith.mulf %82, %85 : vector<1x128xf32>
    %87 = arith.addf %78, %86 : vector<1x128xf32>
    %cst_41 = arith.constant dense<0.000000e+00> : vector<128xf32>
    %88 = vector.multi_reduction <add>, %33#6, %cst_41 [0] : vector<8x128xf32> to vector<128xf32>
    %89 = vector.shape_cast %88 : vector<128xf32> to vector<1x128xf32>
    %cst_42 = arith.constant 6.10351563E-5 : f32
    %90 = vector.broadcast %cst_42 : f32 to vector<1x128xf32>
    %91 = arith.mulf %89, %90 : vector<1x128xf32>
    %cst_43 = arith.constant 9.99999997E-7 : f32
    %92 = vector.broadcast %cst_43 : f32 to vector<1x128xf32>
    %93 = arith.addf %91, %92 : vector<1x128xf32>
    %94 = math.log %93 : vector<1x128xf32>
    %95 = arith.mulf %91, %94 : vector<1x128xf32>
    %96 = arith.addf %87, %95 : vector<1x128xf32>
    %cst_44 = arith.constant dense<0.000000e+00> : vector<128xf32>
    %97 = vector.multi_reduction <add>, %33#7, %cst_44 [0] : vector<8x128xf32> to vector<128xf32>
    %98 = vector.shape_cast %97 : vector<128xf32> to vector<1x128xf32>
    %cst_45 = arith.constant 6.10351563E-5 : f32
    %99 = vector.broadcast %cst_45 : f32 to vector<1x128xf32>
    %100 = arith.mulf %98, %99 : vector<1x128xf32>
    %cst_46 = arith.constant 9.99999997E-7 : f32
    %101 = vector.broadcast %cst_46 : f32 to vector<1x128xf32>
    %102 = arith.addf %100, %101 : vector<1x128xf32>
    %103 = math.log %102 : vector<1x128xf32>
    %104 = arith.mulf %100, %103 : vector<1x128xf32>
    %105 = arith.addf %96, %104 : vector<1x128xf32>
    %cst_47 = arith.constant dense<0.000000e+00> : vector<128xf32>
    %106 = vector.multi_reduction <add>, %33#8, %cst_47 [0] : vector<8x128xf32> to vector<128xf32>
    %107 = vector.shape_cast %106 : vector<128xf32> to vector<1x128xf32>
    %cst_48 = arith.constant 6.10351563E-5 : f32
    %108 = vector.broadcast %cst_48 : f32 to vector<1x128xf32>
    %109 = arith.mulf %107, %108 : vector<1x128xf32>
    %cst_49 = arith.constant 9.99999997E-7 : f32
    %110 = vector.broadcast %cst_49 : f32 to vector<1x128xf32>
    %111 = arith.addf %109, %110 : vector<1x128xf32>
    %112 = math.log %111 : vector<1x128xf32>
    %113 = arith.mulf %109, %112 : vector<1x128xf32>
    %114 = arith.addf %105, %113 : vector<1x128xf32>
    %cst_50 = arith.constant dense<0.000000e+00> : vector<128xf32>
    %115 = vector.multi_reduction <add>, %33#9, %cst_50 [0] : vector<8x128xf32> to vector<128xf32>
    %116 = vector.shape_cast %115 : vector<128xf32> to vector<1x128xf32>
    %cst_51 = arith.constant 6.10351563E-5 : f32
    %117 = vector.broadcast %cst_51 : f32 to vector<1x128xf32>
    %118 = arith.mulf %116, %117 : vector<1x128xf32>
    %cst_52 = arith.constant 9.99999997E-7 : f32
    %119 = vector.broadcast %cst_52 : f32 to vector<1x128xf32>
    %120 = arith.addf %118, %119 : vector<1x128xf32>
    %121 = math.log %120 : vector<1x128xf32>
    %122 = arith.mulf %118, %121 : vector<1x128xf32>
    %123 = arith.addf %114, %122 : vector<1x128xf32>
    %cst_53 = arith.constant dense<0.000000e+00> : vector<128xf32>
    %124 = vector.multi_reduction <add>, %33#10, %cst_53 [0] : vector<8x128xf32> to vector<128xf32>
    %125 = vector.shape_cast %124 : vector<128xf32> to vector<1x128xf32>
    %cst_54 = arith.constant 6.10351563E-5 : f32
    %126 = vector.broadcast %cst_54 : f32 to vector<1x128xf32>
    %127 = arith.mulf %125, %126 : vector<1x128xf32>
    %cst_55 = arith.constant 9.99999997E-7 : f32
    %128 = vector.broadcast %cst_55 : f32 to vector<1x128xf32>
    %129 = arith.addf %127, %128 : vector<1x128xf32>
    %130 = math.log %129 : vector<1x128xf32>
    %131 = arith.mulf %127, %130 : vector<1x128xf32>
    %132 = arith.addf %123, %131 : vector<1x128xf32>
    %cst_56 = arith.constant dense<0.000000e+00> : vector<128xf32>
    %133 = vector.multi_reduction <add>, %33#11, %cst_56 [0] : vector<8x128xf32> to vector<128xf32>
    %134 = vector.shape_cast %133 : vector<128xf32> to vector<1x128xf32>
    %cst_57 = arith.constant 6.10351563E-5 : f32
    %135 = vector.broadcast %cst_57 : f32 to vector<1x128xf32>
    %136 = arith.mulf %134, %135 : vector<1x128xf32>
    %cst_58 = arith.constant 9.99999997E-7 : f32
    %137 = vector.broadcast %cst_58 : f32 to vector<1x128xf32>
    %138 = arith.addf %136, %137 : vector<1x128xf32>
    %139 = math.log %138 : vector<1x128xf32>
    %140 = arith.mulf %136, %139 : vector<1x128xf32>
    %141 = arith.addf %132, %140 : vector<1x128xf32>
    %cst_59 = arith.constant dense<0.000000e+00> : vector<128xf32>
    %142 = vector.multi_reduction <add>, %33#12, %cst_59 [0] : vector<8x128xf32> to vector<128xf32>
    %143 = vector.shape_cast %142 : vector<128xf32> to vector<1x128xf32>
    %cst_60 = arith.constant 6.10351563E-5 : f32
    %144 = vector.broadcast %cst_60 : f32 to vector<1x128xf32>
    %145 = arith.mulf %143, %144 : vector<1x128xf32>
    %cst_61 = arith.constant 9.99999997E-7 : f32
    %146 = vector.broadcast %cst_61 : f32 to vector<1x128xf32>
    %147 = arith.addf %145, %146 : vector<1x128xf32>
    %148 = math.log %147 : vector<1x128xf32>
    %149 = arith.mulf %145, %148 : vector<1x128xf32>
    %150 = arith.addf %141, %149 : vector<1x128xf32>
    %cst_62 = arith.constant dense<0.000000e+00> : vector<128xf32>
    %151 = vector.multi_reduction <add>, %33#13, %cst_62 [0] : vector<8x128xf32> to vector<128xf32>
    %152 = vector.shape_cast %151 : vector<128xf32> to vector<1x128xf32>
    %cst_63 = arith.constant 6.10351563E-5 : f32
    %153 = vector.broadcast %cst_63 : f32 to vector<1x128xf32>
    %154 = arith.mulf %152, %153 : vector<1x128xf32>
    %cst_64 = arith.constant 9.99999997E-7 : f32
    %155 = vector.broadcast %cst_64 : f32 to vector<1x128xf32>
    %156 = arith.addf %154, %155 : vector<1x128xf32>
    %157 = math.log %156 : vector<1x128xf32>
    %158 = arith.mulf %154, %157 : vector<1x128xf32>
    %159 = arith.addf %150, %158 : vector<1x128xf32>
    %cst_65 = arith.constant dense<0.000000e+00> : vector<128xf32>
    %160 = vector.multi_reduction <add>, %33#14, %cst_65 [0] : vector<8x128xf32> to vector<128xf32>
    %161 = vector.shape_cast %160 : vector<128xf32> to vector<1x128xf32>
    %cst_66 = arith.constant 6.10351563E-5 : f32
    %162 = vector.broadcast %cst_66 : f32 to vector<1x128xf32>
    %163 = arith.mulf %161, %162 : vector<1x128xf32>
    %cst_67 = arith.constant 9.99999997E-7 : f32
    %164 = vector.broadcast %cst_67 : f32 to vector<1x128xf32>
    %165 = arith.addf %163, %164 : vector<1x128xf32>
    %166 = math.log %165 : vector<1x128xf32>
    %167 = arith.mulf %163, %166 : vector<1x128xf32>
    %168 = arith.addf %159, %167 : vector<1x128xf32>
    %cst_68 = arith.constant dense<0.000000e+00> : vector<128xf32>
    %169 = vector.multi_reduction <add>, %33#15, %cst_68 [0] : vector<8x128xf32> to vector<128xf32>
    %170 = vector.shape_cast %169 : vector<128xf32> to vector<1x128xf32>
    %cst_69 = arith.constant 6.10351563E-5 : f32
    %171 = vector.broadcast %cst_69 : f32 to vector<1x128xf32>
    %172 = arith.mulf %170, %171 : vector<1x128xf32>
    %cst_70 = arith.constant 9.99999997E-7 : f32
    %173 = vector.broadcast %cst_70 : f32 to vector<1x128xf32>
    %174 = arith.addf %172, %173 : vector<1x128xf32>
    %175 = math.log %174 : vector<1x128xf32>
    %176 = arith.mulf %172, %175 : vector<1x128xf32>
    %177 = arith.addf %168, %176 : vector<1x128xf32>
    %c2_i32_71 = arith.constant 2 : i32
    %178 = arith.muli %arg0, %c2_i32_71 : i32
    %c2_i32_72 = arith.constant 2 : i32
    %179 = arith.muli %arg1, %c2_i32_72 : i32
    %180 = arith.addi %178, %179 : i32
    %c1_i32_73 = arith.constant 1 : i32
    %181 = arith.addi %180, %c1_i32_73 : i32
    %182 = arith.index_cast %181 : i32 to index
    %183 = memref.load %arg2[%182] : memref<2xf32, #tpu.memory_space<smem>>
    %184 = arith.index_cast %181 : i32 to index
    %185 = memref.load %arg3[%184] : memref<2xf32, #tpu.memory_space<smem>>
    %cst_74 = arith.constant 9.99999997E-7 : f32
    %186 = arith.subf %185, %cst_74 : f32
    %187 = arith.minimumf %183, %186 : f32
    %cst_75 = arith.constant 9.99999997E-7 : f32
    %188 = arith.addf %187, %cst_75 : f32
    %189 = arith.maximumf %185, %188 : f32
    %190 = arith.subf %189, %187 : f32
    %cst_76 = arith.constant 9.99999997E-7 : f32
    %191 = arith.addf %190, %cst_76 : f32
    %cst_77 = arith.constant 1.000000e+00 : f32
    %192 = arith.divf %cst_77, %191 : f32
    %cst_78 = arith.constant 0.000000e+00 : f32
    %193 = vector.broadcast %cst_78 : f32 to vector<8x128xf32>
    %cst_79 = arith.constant 0.000000e+00 : f32
    %194 = vector.broadcast %cst_79 : f32 to vector<8x128xf32>
    %cst_80 = arith.constant 0.000000e+00 : f32
    %195 = vector.broadcast %cst_80 : f32 to vector<8x128xf32>
    %cst_81 = arith.constant 0.000000e+00 : f32
    %196 = vector.broadcast %cst_81 : f32 to vector<8x128xf32>
    %cst_82 = arith.constant 0.000000e+00 : f32
    %197 = vector.broadcast %cst_82 : f32 to vector<8x128xf32>
    %cst_83 = arith.constant 0.000000e+00 : f32
    %198 = vector.broadcast %cst_83 : f32 to vector<8x128xf32>
    %cst_84 = arith.constant 0.000000e+00 : f32
    %199 = vector.broadcast %cst_84 : f32 to vector<8x128xf32>
    %cst_85 = arith.constant 0.000000e+00 : f32
    %200 = vector.broadcast %cst_85 : f32 to vector<8x128xf32>
    %cst_86 = arith.constant 0.000000e+00 : f32
    %201 = vector.broadcast %cst_86 : f32 to vector<8x128xf32>
    %cst_87 = arith.constant 0.000000e+00 : f32
    %202 = vector.broadcast %cst_87 : f32 to vector<8x128xf32>
    %cst_88 = arith.constant 0.000000e+00 : f32
    %203 = vector.broadcast %cst_88 : f32 to vector<8x128xf32>
    %cst_89 = arith.constant 0.000000e+00 : f32
    %204 = vector.broadcast %cst_89 : f32 to vector<8x128xf32>
    %cst_90 = arith.constant 0.000000e+00 : f32
    %205 = vector.broadcast %cst_90 : f32 to vector<8x128xf32>
    %cst_91 = arith.constant 0.000000e+00 : f32
    %206 = vector.broadcast %cst_91 : f32 to vector<8x128xf32>
    %cst_92 = arith.constant 0.000000e+00 : f32
    %207 = vector.broadcast %cst_92 : f32 to vector<8x128xf32>
    %cst_93 = arith.constant 0.000000e+00 : f32
    %208 = vector.broadcast %cst_93 : f32 to vector<8x128xf32>
    %c0_i32_94 = arith.constant 0 : i32
    %c16_i32_95 = arith.constant 16 : i32
    %209 = arith.addi %c0_i32_94, %c16_i32_95 : i32
    %c1_i32_96 = arith.constant 1 : i32
    %210:16 = scf.for %arg7 = %c0_i32_94 to %209 step %c1_i32_96 iter_args(%arg8 = %193, %arg9 = %194, %arg10 = %195, %arg11 = %196, %arg12 = %197, %arg13 = %198, %arg14 = %199, %arg15 = %200, %arg16 = %201, %arg17 = %202, %arg18 = %203, %arg19 = %204, %arg20 = %205, %arg21 = %206, %arg22 = %207, %arg23 = %208) -> (vector<8x128xf32>, vector<8x128xf32>, vector<8x128xf32>, vector<8x128xf32>, vector<8x128xf32>, vector<8x128xf32>, vector<8x128xf32>, vector<8x128xf32>, vector<8x128xf32>, vector<8x128xf32>, vector<8x128xf32>, vector<8x128xf32>, vector<8x128xf32>, vector<8x128xf32>, vector<8x128xf32>, vector<8x128xf32>)  : i32 {
      %c8_i32 = arith.constant 8 : i32
      %364 = arith.muli %arg7, %c8_i32 : i32
      %365 = tpu.assume_multiple %364, 8 : i32
      %366 = arith.index_cast %365 : i32 to index
      %c128 = arith.constant 128 : index
      %367 = vector.load %arg4[%366, %c128] : memref<128x256xf32, #tpu.memory_space<vmem>>, vector<8x128xf32>
      %368 = vector.broadcast %187 : f32 to vector<8x128xf32>
      %369 = arith.subf %367, %368 : vector<8x128xf32>
      %370 = vector.broadcast %192 : f32 to vector<8x128xf32>
      %371 = arith.mulf %369, %370 : vector<8x128xf32>
      %cst_150 = arith.constant 0.000000e+00 : f32
      %cst_151 = arith.constant 1.000000e+00 : f32
      %372 = vector.broadcast %cst_150 : f32 to vector<8x128xf32>
      %373 = arith.maximumf %372, %371 : vector<8x128xf32>
      %374 = vector.broadcast %cst_151 : f32 to vector<8x128xf32>
      %375 = arith.minimumf %374, %373 : vector<8x128xf32>
      %cst_152 = arith.constant 0.000000e+00 : f32
      %376 = vector.broadcast %cst_152 : f32 to vector<8x128xf32>
      %377 = arith.subf %375, %376 : vector<8x128xf32>
      %378 = math.absf %377 : vector<8x128xf32>
      %cst_153 = arith.constant -1.000000e+02 : f32
      %379 = vector.broadcast %cst_153 : f32 to vector<8x128xf32>
      %380 = arith.mulf %378, %379 : vector<8x128xf32>
      %381 = math.exp %380 : vector<8x128xf32>
      %cst_154 = arith.constant 0.0666666701 : f32
      %382 = vector.broadcast %cst_154 : f32 to vector<8x128xf32>
      %383 = arith.subf %375, %382 : vector<8x128xf32>
      %384 = math.absf %383 : vector<8x128xf32>
      %cst_155 = arith.constant -1.000000e+02 : f32
      %385 = vector.broadcast %cst_155 : f32 to vector<8x128xf32>
      %386 = arith.mulf %384, %385 : vector<8x128xf32>
      %387 = math.exp %386 : vector<8x128xf32>
      %388 = arith.addf %381, %387 : vector<8x128xf32>
      %cst_156 = arith.constant 0.13333334 : f32
      %389 = vector.broadcast %cst_156 : f32 to vector<8x128xf32>
      %390 = arith.subf %375, %389 : vector<8x128xf32>
      %391 = math.absf %390 : vector<8x128xf32>
      %cst_157 = arith.constant -1.000000e+02 : f32
      %392 = vector.broadcast %cst_157 : f32 to vector<8x128xf32>
      %393 = arith.mulf %391, %392 : vector<8x128xf32>
      %394 = math.exp %393 : vector<8x128xf32>
      %395 = arith.addf %388, %394 : vector<8x128xf32>
      %cst_158 = arith.constant 2.000000e-01 : f32
      %396 = vector.broadcast %cst_158 : f32 to vector<8x128xf32>
      %397 = arith.subf %375, %396 : vector<8x128xf32>
      %398 = math.absf %397 : vector<8x128xf32>
      %cst_159 = arith.constant -1.000000e+02 : f32
      %399 = vector.broadcast %cst_159 : f32 to vector<8x128xf32>
      %400 = arith.mulf %398, %399 : vector<8x128xf32>
      %401 = math.exp %400 : vector<8x128xf32>
      %402 = arith.addf %395, %401 : vector<8x128xf32>
      %cst_160 = arith.constant 0.266666681 : f32
      %403 = vector.broadcast %cst_160 : f32 to vector<8x128xf32>
      %404 = arith.subf %375, %403 : vector<8x128xf32>
      %405 = math.absf %404 : vector<8x128xf32>
      %cst_161 = arith.constant -1.000000e+02 : f32
      %406 = vector.broadcast %cst_161 : f32 to vector<8x128xf32>
      %407 = arith.mulf %405, %406 : vector<8x128xf32>
      %408 = math.exp %407 : vector<8x128xf32>
      %409 = arith.addf %402, %408 : vector<8x128xf32>
      %cst_162 = arith.constant 0.333333343 : f32
      %410 = vector.broadcast %cst_162 : f32 to vector<8x128xf32>
      %411 = arith.subf %375, %410 : vector<8x128xf32>
      %412 = math.absf %411 : vector<8x128xf32>
      %cst_163 = arith.constant -1.000000e+02 : f32
      %413 = vector.broadcast %cst_163 : f32 to vector<8x128xf32>
      %414 = arith.mulf %412, %413 : vector<8x128xf32>
      %415 = math.exp %414 : vector<8x128xf32>
      %416 = arith.addf %409, %415 : vector<8x128xf32>
      %cst_164 = arith.constant 4.000000e-01 : f32
      %417 = vector.broadcast %cst_164 : f32 to vector<8x128xf32>
      %418 = arith.subf %375, %417 : vector<8x128xf32>
      %419 = math.absf %418 : vector<8x128xf32>
      %cst_165 = arith.constant -1.000000e+02 : f32
      %420 = vector.broadcast %cst_165 : f32 to vector<8x128xf32>
      %421 = arith.mulf %419, %420 : vector<8x128xf32>
      %422 = math.exp %421 : vector<8x128xf32>
      %423 = arith.addf %416, %422 : vector<8x128xf32>
      %cst_166 = arith.constant 0.466666669 : f32
      %424 = vector.broadcast %cst_166 : f32 to vector<8x128xf32>
      %425 = arith.subf %375, %424 : vector<8x128xf32>
      %426 = math.absf %425 : vector<8x128xf32>
      %cst_167 = arith.constant -1.000000e+02 : f32
      %427 = vector.broadcast %cst_167 : f32 to vector<8x128xf32>
      %428 = arith.mulf %426, %427 : vector<8x128xf32>
      %429 = math.exp %428 : vector<8x128xf32>
      %430 = arith.addf %423, %429 : vector<8x128xf32>
      %cst_168 = arith.constant 0.533333361 : f32
      %431 = vector.broadcast %cst_168 : f32 to vector<8x128xf32>
      %432 = arith.subf %375, %431 : vector<8x128xf32>
      %433 = math.absf %432 : vector<8x128xf32>
      %cst_169 = arith.constant -1.000000e+02 : f32
      %434 = vector.broadcast %cst_169 : f32 to vector<8x128xf32>
      %435 = arith.mulf %433, %434 : vector<8x128xf32>
      %436 = math.exp %435 : vector<8x128xf32>
      %437 = arith.addf %430, %436 : vector<8x128xf32>
      %cst_170 = arith.constant 6.000000e-01 : f32
      %438 = vector.broadcast %cst_170 : f32 to vector<8x128xf32>
      %439 = arith.subf %375, %438 : vector<8x128xf32>
      %440 = math.absf %439 : vector<8x128xf32>
      %cst_171 = arith.constant -1.000000e+02 : f32
      %441 = vector.broadcast %cst_171 : f32 to vector<8x128xf32>
      %442 = arith.mulf %440, %441 : vector<8x128xf32>
      %443 = math.exp %442 : vector<8x128xf32>
      %444 = arith.addf %437, %443 : vector<8x128xf32>
      %cst_172 = arith.constant 0.666666686 : f32
      %445 = vector.broadcast %cst_172 : f32 to vector<8x128xf32>
      %446 = arith.subf %375, %445 : vector<8x128xf32>
      %447 = math.absf %446 : vector<8x128xf32>
      %cst_173 = arith.constant -1.000000e+02 : f32
      %448 = vector.broadcast %cst_173 : f32 to vector<8x128xf32>
      %449 = arith.mulf %447, %448 : vector<8x128xf32>
      %450 = math.exp %449 : vector<8x128xf32>
      %451 = arith.addf %444, %450 : vector<8x128xf32>
      %cst_174 = arith.constant 0.733333349 : f32
      %452 = vector.broadcast %cst_174 : f32 to vector<8x128xf32>
      %453 = arith.subf %375, %452 : vector<8x128xf32>
      %454 = math.absf %453 : vector<8x128xf32>
      %cst_175 = arith.constant -1.000000e+02 : f32
      %455 = vector.broadcast %cst_175 : f32 to vector<8x128xf32>
      %456 = arith.mulf %454, %455 : vector<8x128xf32>
      %457 = math.exp %456 : vector<8x128xf32>
      %458 = arith.addf %451, %457 : vector<8x128xf32>
      %cst_176 = arith.constant 8.000000e-01 : f32
      %459 = vector.broadcast %cst_176 : f32 to vector<8x128xf32>
      %460 = arith.subf %375, %459 : vector<8x128xf32>
      %461 = math.absf %460 : vector<8x128xf32>
      %cst_177 = arith.constant -1.000000e+02 : f32
      %462 = vector.broadcast %cst_177 : f32 to vector<8x128xf32>
      %463 = arith.mulf %461, %462 : vector<8x128xf32>
      %464 = math.exp %463 : vector<8x128xf32>
      %465 = arith.addf %458, %464 : vector<8x128xf32>
      %cst_178 = arith.constant 0.866666674 : f32
      %466 = vector.broadcast %cst_178 : f32 to vector<8x128xf32>
      %467 = arith.subf %375, %466 : vector<8x128xf32>
      %468 = math.absf %467 : vector<8x128xf32>
      %cst_179 = arith.constant -1.000000e+02 : f32
      %469 = vector.broadcast %cst_179 : f32 to vector<8x128xf32>
      %470 = arith.mulf %468, %469 : vector<8x128xf32>
      %471 = math.exp %470 : vector<8x128xf32>
      %472 = arith.addf %465, %471 : vector<8x128xf32>
      %cst_180 = arith.constant 0.933333337 : f32
      %473 = vector.broadcast %cst_180 : f32 to vector<8x128xf32>
      %474 = arith.subf %375, %473 : vector<8x128xf32>
      %475 = math.absf %474 : vector<8x128xf32>
      %cst_181 = arith.constant -1.000000e+02 : f32
      %476 = vector.broadcast %cst_181 : f32 to vector<8x128xf32>
      %477 = arith.mulf %475, %476 : vector<8x128xf32>
      %478 = math.exp %477 : vector<8x128xf32>
      %479 = arith.addf %472, %478 : vector<8x128xf32>
      %cst_182 = arith.constant 1.000000e+00 : f32
      %480 = vector.broadcast %cst_182 : f32 to vector<8x128xf32>
      %481 = arith.subf %375, %480 : vector<8x128xf32>
      %482 = math.absf %481 : vector<8x128xf32>
      %cst_183 = arith.constant -1.000000e+02 : f32
      %483 = vector.broadcast %cst_183 : f32 to vector<8x128xf32>
      %484 = arith.mulf %482, %483 : vector<8x128xf32>
      %485 = math.exp %484 : vector<8x128xf32>
      %486 = arith.addf %479, %485 : vector<8x128xf32>
      %487 = tpu.reciprocal %486 {approx = true} : vector<8x128xf32> -> vector<8x128xf32>
      %488 = arith.mulf %486, %487 : vector<8x128xf32>
      %cst_184 = arith.constant 2.000000e+00 : f32
      %489 = vector.broadcast %cst_184 : f32 to vector<8x128xf32>
      %490 = arith.subf %489, %488 : vector<8x128xf32>
      %491 = arith.mulf %487, %490 : vector<8x128xf32>
      %492 = arith.mulf %381, %491 : vector<8x128xf32>
      %493 = arith.addf %arg8, %492 : vector<8x128xf32>
      %494 = arith.mulf %387, %491 : vector<8x128xf32>
      %495 = arith.addf %arg9, %494 : vector<8x128xf32>
      %cst_185 = arith.constant 0.0666666701 : f32
      %496 = vector.broadcast %cst_185 : f32 to vector<8x128xf32>
      %497 = arith.mulf %494, %496 : vector<8x128xf32>
      %498 = arith.mulf %394, %491 : vector<8x128xf32>
      %499 = arith.addf %arg10, %498 : vector<8x128xf32>
      %cst_186 = arith.constant 0.13333334 : f32
      %500 = vector.broadcast %cst_186 : f32 to vector<8x128xf32>
      %501 = arith.mulf %498, %500 : vector<8x128xf32>
      %502 = arith.addf %497, %501 : vector<8x128xf32>
      %503 = arith.mulf %401, %491 : vector<8x128xf32>
      %504 = arith.addf %arg11, %503 : vector<8x128xf32>
      %cst_187 = arith.constant 2.000000e-01 : f32
      %505 = vector.broadcast %cst_187 : f32 to vector<8x128xf32>
      %506 = arith.mulf %503, %505 : vector<8x128xf32>
      %507 = arith.addf %502, %506 : vector<8x128xf32>
      %508 = arith.mulf %408, %491 : vector<8x128xf32>
      %509 = arith.addf %arg12, %508 : vector<8x128xf32>
      %cst_188 = arith.constant 0.266666681 : f32
      %510 = vector.broadcast %cst_188 : f32 to vector<8x128xf32>
      %511 = arith.mulf %508, %510 : vector<8x128xf32>
      %512 = arith.addf %507, %511 : vector<8x128xf32>
      %513 = arith.mulf %415, %491 : vector<8x128xf32>
      %514 = arith.addf %arg13, %513 : vector<8x128xf32>
      %cst_189 = arith.constant 0.333333343 : f32
      %515 = vector.broadcast %cst_189 : f32 to vector<8x128xf32>
      %516 = arith.mulf %513, %515 : vector<8x128xf32>
      %517 = arith.addf %512, %516 : vector<8x128xf32>
      %518 = arith.mulf %422, %491 : vector<8x128xf32>
      %519 = arith.addf %arg14, %518 : vector<8x128xf32>
      %cst_190 = arith.constant 4.000000e-01 : f32
      %520 = vector.broadcast %cst_190 : f32 to vector<8x128xf32>
      %521 = arith.mulf %518, %520 : vector<8x128xf32>
      %522 = arith.addf %517, %521 : vector<8x128xf32>
      %523 = arith.mulf %429, %491 : vector<8x128xf32>
      %524 = arith.addf %arg15, %523 : vector<8x128xf32>
      %cst_191 = arith.constant 0.466666669 : f32
      %525 = vector.broadcast %cst_191 : f32 to vector<8x128xf32>
      %526 = arith.mulf %523, %525 : vector<8x128xf32>
      %527 = arith.addf %522, %526 : vector<8x128xf32>
      %528 = arith.mulf %436, %491 : vector<8x128xf32>
      %529 = arith.addf %arg16, %528 : vector<8x128xf32>
      %cst_192 = arith.constant 0.533333361 : f32
      %530 = vector.broadcast %cst_192 : f32 to vector<8x128xf32>
      %531 = arith.mulf %528, %530 : vector<8x128xf32>
      %532 = arith.addf %527, %531 : vector<8x128xf32>
      %533 = arith.mulf %443, %491 : vector<8x128xf32>
      %534 = arith.addf %arg17, %533 : vector<8x128xf32>
      %cst_193 = arith.constant 6.000000e-01 : f32
      %535 = vector.broadcast %cst_193 : f32 to vector<8x128xf32>
      %536 = arith.mulf %533, %535 : vector<8x128xf32>
      %537 = arith.addf %532, %536 : vector<8x128xf32>
      %538 = arith.mulf %450, %491 : vector<8x128xf32>
      %539 = arith.addf %arg18, %538 : vector<8x128xf32>
      %cst_194 = arith.constant 0.666666686 : f32
      %540 = vector.broadcast %cst_194 : f32 to vector<8x128xf32>
      %541 = arith.mulf %538, %540 : vector<8x128xf32>
      %542 = arith.addf %537, %541 : vector<8x128xf32>
      %543 = arith.mulf %457, %491 : vector<8x128xf32>
      %544 = arith.addf %arg19, %543 : vector<8x128xf32>
      %cst_195 = arith.constant 0.733333349 : f32
      %545 = vector.broadcast %cst_195 : f32 to vector<8x128xf32>
      %546 = arith.mulf %543, %545 : vector<8x128xf32>
      %547 = arith.addf %542, %546 : vector<8x128xf32>
      %548 = arith.mulf %464, %491 : vector<8x128xf32>
      %549 = arith.addf %arg20, %548 : vector<8x128xf32>
      %cst_196 = arith.constant 8.000000e-01 : f32
      %550 = vector.broadcast %cst_196 : f32 to vector<8x128xf32>
      %551 = arith.mulf %548, %550 : vector<8x128xf32>
      %552 = arith.addf %547, %551 : vector<8x128xf32>
      %553 = arith.mulf %471, %491 : vector<8x128xf32>
      %554 = arith.addf %arg21, %553 : vector<8x128xf32>
      %cst_197 = arith.constant 0.866666674 : f32
      %555 = vector.broadcast %cst_197 : f32 to vector<8x128xf32>
      %556 = arith.mulf %553, %555 : vector<8x128xf32>
      %557 = arith.addf %552, %556 : vector<8x128xf32>
      %558 = arith.mulf %478, %491 : vector<8x128xf32>
      %559 = arith.addf %arg22, %558 : vector<8x128xf32>
      %cst_198 = arith.constant 0.933333337 : f32
      %560 = vector.broadcast %cst_198 : f32 to vector<8x128xf32>
      %561 = arith.mulf %558, %560 : vector<8x128xf32>
      %562 = arith.addf %557, %561 : vector<8x128xf32>
      %563 = arith.mulf %485, %491 : vector<8x128xf32>
      %564 = arith.addf %arg23, %563 : vector<8x128xf32>
      %cst_199 = arith.constant 1.000000e+00 : f32
      %565 = vector.broadcast %cst_199 : f32 to vector<8x128xf32>
      %566 = arith.mulf %563, %565 : vector<8x128xf32>
      %567 = arith.addf %562, %566 : vector<8x128xf32>
      %568 = vector.broadcast %190 : f32 to vector<8x128xf32>
      %569 = arith.mulf %567, %568 : vector<8x128xf32>
      %570 = vector.broadcast %187 : f32 to vector<8x128xf32>
      %571 = arith.addf %569, %570 : vector<8x128xf32>
      %572 = arith.index_cast %365 : i32 to index
      %c128_200 = arith.constant 128 : index
      %573 = vector.load %arg5[%572, %c128_200] : memref<128x256xf32, #tpu.memory_space<vmem>>, vector<8x128xf32>
      tpu.vector_store %arg5[%572, %c128_200], %571 {strides = array<i32>} : memref<128x256xf32, #tpu.memory_space<vmem>>, vector<8x128xf32>,
      scf.yield %493, %495, %499, %504, %509, %514, %519, %524, %529, %534, %539, %544, %549, %554, %559, %564 : vector<8x128xf32>, vector<8x128xf32>, vector<8x128xf32>, vector<8x128xf32>, vector<8x128xf32>, vector<8x128xf32>, vector<8x128xf32>, vector<8x128xf32>, vector<8x128xf32>, vector<8x128xf32>, vector<8x128xf32>, vector<8x128xf32>, vector<8x128xf32>, vector<8x128xf32>, vector<8x128xf32>, vector<8x128xf32>
    }
    %c16_i32_97 = arith.constant 16 : i32
    %cst_98 = arith.constant dense<0.000000e+00> : vector<128xf32>
    %211 = vector.multi_reduction <add>, %210#0, %cst_98 [0] : vector<8x128xf32> to vector<128xf32>
    %212 = vector.shape_cast %211 : vector<128xf32> to vector<1x128xf32>
    %cst_99 = arith.constant 6.10351563E-5 : f32
    %213 = vector.broadcast %cst_99 : f32 to vector<1x128xf32>
    %214 = arith.mulf %212, %213 : vector<1x128xf32>
    %cst_100 = arith.constant 9.99999997E-7 : f32
    %215 = vector.broadcast %cst_100 : f32 to vector<1x128xf32>
    %216 = arith.addf %214, %215 : vector<1x128xf32>
    %217 = math.log %216 : vector<1x128xf32>
    %218 = arith.mulf %214, %217 : vector<1x128xf32>
    %219 = arith.addf %177, %218 : vector<1x128xf32>
    %cst_101 = arith.constant dense<0.000000e+00> : vector<128xf32>
    %220 = vector.multi_reduction <add>, %210#1, %cst_101 [0] : vector<8x128xf32> to vector<128xf32>
    %221 = vector.shape_cast %220 : vector<128xf32> to vector<1x128xf32>
    %cst_102 = arith.constant 6.10351563E-5 : f32
    %222 = vector.broadcast %cst_102 : f32 to vector<1x128xf32>
    %223 = arith.mulf %221, %222 : vector<1x128xf32>
    %cst_103 = arith.constant 9.99999997E-7 : f32
    %224 = vector.broadcast %cst_103 : f32 to vector<1x128xf32>
    %225 = arith.addf %223, %224 : vector<1x128xf32>
    %226 = math.log %225 : vector<1x128xf32>
    %227 = arith.mulf %223, %226 : vector<1x128xf32>
    %228 = arith.addf %219, %227 : vector<1x128xf32>
    %cst_104 = arith.constant dense<0.000000e+00> : vector<128xf32>
    %229 = vector.multi_reduction <add>, %210#2, %cst_104 [0] : vector<8x128xf32> to vector<128xf32>
    %230 = vector.shape_cast %229 : vector<128xf32> to vector<1x128xf32>
    %cst_105 = arith.constant 6.10351563E-5 : f32
    %231 = vector.broadcast %cst_105 : f32 to vector<1x128xf32>
    %232 = arith.mulf %230, %231 : vector<1x128xf32>
    %cst_106 = arith.constant 9.99999997E-7 : f32
    %233 = vector.broadcast %cst_106 : f32 to vector<1x128xf32>
    %234 = arith.addf %232, %233 : vector<1x128xf32>
    %235 = math.log %234 : vector<1x128xf32>
    %236 = arith.mulf %232, %235 : vector<1x128xf32>
    %237 = arith.addf %228, %236 : vector<1x128xf32>
    %cst_107 = arith.constant dense<0.000000e+00> : vector<128xf32>
    %238 = vector.multi_reduction <add>, %210#3, %cst_107 [0] : vector<8x128xf32> to vector<128xf32>
    %239 = vector.shape_cast %238 : vector<128xf32> to vector<1x128xf32>
    %cst_108 = arith.constant 6.10351563E-5 : f32
    %240 = vector.broadcast %cst_108 : f32 to vector<1x128xf32>
    %241 = arith.mulf %239, %240 : vector<1x128xf32>
    %cst_109 = arith.constant 9.99999997E-7 : f32
    %242 = vector.broadcast %cst_109 : f32 to vector<1x128xf32>
    %243 = arith.addf %241, %242 : vector<1x128xf32>
    %244 = math.log %243 : vector<1x128xf32>
    %245 = arith.mulf %241, %244 : vector<1x128xf32>
    %246 = arith.addf %237, %245 : vector<1x128xf32>
    %cst_110 = arith.constant dense<0.000000e+00> : vector<128xf32>
    %247 = vector.multi_reduction <add>, %210#4, %cst_110 [0] : vector<8x128xf32> to vector<128xf32>
    %248 = vector.shape_cast %247 : vector<128xf32> to vector<1x128xf32>
    %cst_111 = arith.constant 6.10351563E-5 : f32
    %249 = vector.broadcast %cst_111 : f32 to vector<1x128xf32>
    %250 = arith.mulf %248, %249 : vector<1x128xf32>
    %cst_112 = arith.constant 9.99999997E-7 : f32
    %251 = vector.broadcast %cst_112 : f32 to vector<1x128xf32>
    %252 = arith.addf %250, %251 : vector<1x128xf32>
    %253 = math.log %252 : vector<1x128xf32>
    %254 = arith.mulf %250, %253 : vector<1x128xf32>
    %255 = arith.addf %246, %254 : vector<1x128xf32>
    %cst_113 = arith.constant dense<0.000000e+00> : vector<128xf32>
    %256 = vector.multi_reduction <add>, %210#5, %cst_113 [0] : vector<8x128xf32> to vector<128xf32>
    %257 = vector.shape_cast %256 : vector<128xf32> to vector<1x128xf32>
    %cst_114 = arith.constant 6.10351563E-5 : f32
    %258 = vector.broadcast %cst_114 : f32 to vector<1x128xf32>
    %259 = arith.mulf %257, %258 : vector<1x128xf32>
    %cst_115 = arith.constant 9.99999997E-7 : f32
    %260 = vector.broadcast %cst_115 : f32 to vector<1x128xf32>
    %261 = arith.addf %259, %260 : vector<1x128xf32>
    %262 = math.log %261 : vector<1x128xf32>
    %263 = arith.mulf %259, %262 : vector<1x128xf32>
    %264 = arith.addf %255, %263 : vector<1x128xf32>
    %cst_116 = arith.constant dense<0.000000e+00> : vector<128xf32>
    %265 = vector.multi_reduction <add>, %210#6, %cst_116 [0] : vector<8x128xf32> to vector<128xf32>
    %266 = vector.shape_cast %265 : vector<128xf32> to vector<1x128xf32>
    %cst_117 = arith.constant 6.10351563E-5 : f32
    %267 = vector.broadcast %cst_117 : f32 to vector<1x128xf32>
    %268 = arith.mulf %266, %267 : vector<1x128xf32>
    %cst_118 = arith.constant 9.99999997E-7 : f32
    %269 = vector.broadcast %cst_118 : f32 to vector<1x128xf32>
    %270 = arith.addf %268, %269 : vector<1x128xf32>
    %271 = math.log %270 : vector<1x128xf32>
    %272 = arith.mulf %268, %271 : vector<1x128xf32>
    %273 = arith.addf %264, %272 : vector<1x128xf32>
    %cst_119 = arith.constant dense<0.000000e+00> : vector<128xf32>
    %274 = vector.multi_reduction <add>, %210#7, %cst_119 [0] : vector<8x128xf32> to vector<128xf32>
    %275 = vector.shape_cast %274 : vector<128xf32> to vector<1x128xf32>
    %cst_120 = arith.constant 6.10351563E-5 : f32
    %276 = vector.broadcast %cst_120 : f32 to vector<1x128xf32>
    %277 = arith.mulf %275, %276 : vector<1x128xf32>
    %cst_121 = arith.constant 9.99999997E-7 : f32
    %278 = vector.broadcast %cst_121 : f32 to vector<1x128xf32>
    %279 = arith.addf %277, %278 : vector<1x128xf32>
    %280 = math.log %279 : vector<1x128xf32>
    %281 = arith.mulf %277, %280 : vector<1x128xf32>
    %282 = arith.addf %273, %281 : vector<1x128xf32>
    %cst_122 = arith.constant dense<0.000000e+00> : vector<128xf32>
    %283 = vector.multi_reduction <add>, %210#8, %cst_122 [0] : vector<8x128xf32> to vector<128xf32>
    %284 = vector.shape_cast %283 : vector<128xf32> to vector<1x128xf32>
    %cst_123 = arith.constant 6.10351563E-5 : f32
    %285 = vector.broadcast %cst_123 : f32 to vector<1x128xf32>
    %286 = arith.mulf %284, %285 : vector<1x128xf32>
    %cst_124 = arith.constant 9.99999997E-7 : f32
    %287 = vector.broadcast %cst_124 : f32 to vector<1x128xf32>
    %288 = arith.addf %286, %287 : vector<1x128xf32>
    %289 = math.log %288 : vector<1x128xf32>
    %290 = arith.mulf %286, %289 : vector<1x128xf32>
    %291 = arith.addf %282, %290 : vector<1x128xf32>
    %cst_125 = arith.constant dense<0.000000e+00> : vector<128xf32>
    %292 = vector.multi_reduction <add>, %210#9, %cst_125 [0] : vector<8x128xf32> to vector<128xf32>
    %293 = vector.shape_cast %292 : vector<128xf32> to vector<1x128xf32>
    %cst_126 = arith.constant 6.10351563E-5 : f32
    %294 = vector.broadcast %cst_126 : f32 to vector<1x128xf32>
    %295 = arith.mulf %293, %294 : vector<1x128xf32>
    %cst_127 = arith.constant 9.99999997E-7 : f32
    %296 = vector.broadcast %cst_127 : f32 to vector<1x128xf32>
    %297 = arith.addf %295, %296 : vector<1x128xf32>
    %298 = math.log %297 : vector<1x128xf32>
    %299 = arith.mulf %295, %298 : vector<1x128xf32>
    %300 = arith.addf %291, %299 : vector<1x128xf32>
    %cst_128 = arith.constant dense<0.000000e+00> : vector<128xf32>
    %301 = vector.multi_reduction <add>, %210#10, %cst_128 [0] : vector<8x128xf32> to vector<128xf32>
    %302 = vector.shape_cast %301 : vector<128xf32> to vector<1x128xf32>
    %cst_129 = arith.constant 6.10351563E-5 : f32
    %303 = vector.broadcast %cst_129 : f32 to vector<1x128xf32>
    %304 = arith.mulf %302, %303 : vector<1x128xf32>
    %cst_130 = arith.constant 9.99999997E-7 : f32
    %305 = vector.broadcast %cst_130 : f32 to vector<1x128xf32>
    %306 = arith.addf %304, %305 : vector<1x128xf32>
    %307 = math.log %306 : vector<1x128xf32>
    %308 = arith.mulf %304, %307 : vector<1x128xf32>
    %309 = arith.addf %300, %308 : vector<1x128xf32>
    %cst_131 = arith.constant dense<0.000000e+00> : vector<128xf32>
    %310 = vector.multi_reduction <add>, %210#11, %cst_131 [0] : vector<8x128xf32> to vector<128xf32>
    %311 = vector.shape_cast %310 : vector<128xf32> to vector<1x128xf32>
    %cst_132 = arith.constant 6.10351563E-5 : f32
    %312 = vector.broadcast %cst_132 : f32 to vector<1x128xf32>
    %313 = arith.mulf %311, %312 : vector<1x128xf32>
    %cst_133 = arith.constant 9.99999997E-7 : f32
    %314 = vector.broadcast %cst_133 : f32 to vector<1x128xf32>
    %315 = arith.addf %313, %314 : vector<1x128xf32>
    %316 = math.log %315 : vector<1x128xf32>
    %317 = arith.mulf %313, %316 : vector<1x128xf32>
    %318 = arith.addf %309, %317 : vector<1x128xf32>
    %cst_134 = arith.constant dense<0.000000e+00> : vector<128xf32>
    %319 = vector.multi_reduction <add>, %210#12, %cst_134 [0] : vector<8x128xf32> to vector<128xf32>
    %320 = vector.shape_cast %319 : vector<128xf32> to vector<1x128xf32>
    %cst_135 = arith.constant 6.10351563E-5 : f32
    %321 = vector.broadcast %cst_135 : f32 to vector<1x128xf32>
    %322 = arith.mulf %320, %321 : vector<1x128xf32>
    %cst_136 = arith.constant 9.99999997E-7 : f32
    %323 = vector.broadcast %cst_136 : f32 to vector<1x128xf32>
    %324 = arith.addf %322, %323 : vector<1x128xf32>
    %325 = math.log %324 : vector<1x128xf32>
    %326 = arith.mulf %322, %325 : vector<1x128xf32>
    %327 = arith.addf %318, %326 : vector<1x128xf32>
    %cst_137 = arith.constant dense<0.000000e+00> : vector<128xf32>
    %328 = vector.multi_reduction <add>, %210#13, %cst_137 [0] : vector<8x128xf32> to vector<128xf32>
    %329 = vector.shape_cast %328 : vector<128xf32> to vector<1x128xf32>
    %cst_138 = arith.constant 6.10351563E-5 : f32
    %330 = vector.broadcast %cst_138 : f32 to vector<1x128xf32>
    %331 = arith.mulf %329, %330 : vector<1x128xf32>
    %cst_139 = arith.constant 9.99999997E-7 : f32
    %332 = vector.broadcast %cst_139 : f32 to vector<1x128xf32>
    %333 = arith.addf %331, %332 : vector<1x128xf32>
    %334 = math.log %333 : vector<1x128xf32>
    %335 = arith.mulf %331, %334 : vector<1x128xf32>
    %336 = arith.addf %327, %335 : vector<1x128xf32>
    %cst_140 = arith.constant dense<0.000000e+00> : vector<128xf32>
    %337 = vector.multi_reduction <add>, %210#14, %cst_140 [0] : vector<8x128xf32> to vector<128xf32>
    %338 = vector.shape_cast %337 : vector<128xf32> to vector<1x128xf32>
    %cst_141 = arith.constant 6.10351563E-5 : f32
    %339 = vector.broadcast %cst_141 : f32 to vector<1x128xf32>
    %340 = arith.mulf %338, %339 : vector<1x128xf32>
    %cst_142 = arith.constant 9.99999997E-7 : f32
    %341 = vector.broadcast %cst_142 : f32 to vector<1x128xf32>
    %342 = arith.addf %340, %341 : vector<1x128xf32>
    %343 = math.log %342 : vector<1x128xf32>
    %344 = arith.mulf %340, %343 : vector<1x128xf32>
    %345 = arith.addf %336, %344 : vector<1x128xf32>
    %cst_143 = arith.constant dense<0.000000e+00> : vector<128xf32>
    %346 = vector.multi_reduction <add>, %210#15, %cst_143 [0] : vector<8x128xf32> to vector<128xf32>
    %347 = vector.shape_cast %346 : vector<128xf32> to vector<1x128xf32>
    %cst_144 = arith.constant 6.10351563E-5 : f32
    %348 = vector.broadcast %cst_144 : f32 to vector<1x128xf32>
    %349 = arith.mulf %347, %348 : vector<1x128xf32>
    %cst_145 = arith.constant 9.99999997E-7 : f32
    %350 = vector.broadcast %cst_145 : f32 to vector<1x128xf32>
    %351 = arith.addf %349, %350 : vector<1x128xf32>
    %352 = math.log %351 : vector<1x128xf32>
    %353 = arith.mulf %349, %352 : vector<1x128xf32>
    %354 = arith.addf %345, %353 : vector<1x128xf32>
    %355 = vector.shape_cast %354 : vector<1x128xf32> to vector<1x1x128xf32>
    %cst_146 = arith.constant dense<0.000000e+00> : vector<1xf32>
    %356 = vector.multi_reduction <add>, %355, %cst_146 [1, 2] : vector<1x1x128xf32> to vector<1xf32>
    %357 = vector.shape_cast %356 : vector<1xf32> to vector<1x1x1xf32>
    %358 = vector.extract %357[0, 0, 0] : f32 from vector<1x1x1xf32>
    %cst_147 = arith.constant 0.000000e+00 : f32
    %359 = arith.subf %cst_147, %358 : f32
    %cst_148 = arith.constant 0.000000e+00 : f32
    %360 = vector.broadcast %cst_148 : f32 to vector<8x128xf32>
    %361 = vector.broadcast %359 : f32 to vector<8x128xf32>
    %362 = arith.addf %360, %361 : vector<8x128xf32>
    %c0 = arith.constant 0 : index
    %c0_149 = arith.constant 0 : index
    %363 = vector.load %arg6[%c0, %c0_149] : memref<8x128xf32, #tpu.memory_space<vmem>>, vector<8x128xf32>
    tpu.vector_store %arg6[%c0, %c0_149], %362 {strides = array<i32>} : memref<8x128xf32, #tpu.memory_space<vmem>>, vector<8x128xf32>,
    return
  }
  func.func @transform_0(%arg0: i32, %arg1: i32) -> i32 {
    %c0_i32 = arith.constant 0 : i32
    %c0_i32_0 = arith.constant 0 : i32
    return %c0_i32 : i32
  }
  func.func @transform_1(%arg0: i32, %arg1: i32) -> i32 {
    %c0_i32 = arith.constant 0 : i32
    %c0_i32_0 = arith.constant 0 : i32
    return %c0_i32 : i32
  }
  func.func @transform_2(%arg0: i32, %arg1: i32) -> (i32, i32) {
    %c0_i32 = arith.constant 0 : i32
    return %arg0, %arg1 : i32, i32
  }
  func.func @transform_3(%arg0: i32, %arg1: i32) -> (i32, i32) {
    %c0_i32 = arith.constant 0 : i32
    return %arg0, %arg1 : i32, i32
  }
  func.func @transform_4(%arg0: i32, %arg1: i32) -> (i32, i32) {
    %c0_i32 = arith.constant 0 : i32
    return %arg0, %arg1 : i32, i32
  }
}

</mosaic_0001>

<bundles_post_ra>
// kernel: tpu_custom_call.1
= control target key start
LH: loop header
LB: loop body
LE: loop exit
PB: predicated region body
PF: predicated region fallthrough
CT: control target
= control target key end

     0   :  { %10 = vsyncpa [#allocation5], 0  ;;  %s2549_s0 = inlined_call_operand.hbm [shape: f32[2], index: 0, kind: input, shape index: {}]   ;;  %s2550_s1 = inlined_call_operand.vmem [shape: f32[2], index: 1, kind: input, shape index: {}]   ;;  %s2551_s2 = inlined_call_operand.hbm [shape: f32[128,256], index: 2, kind: input, shape index: {}]   ;;  %s2552_s3 = inlined_call_operand.hbm [shape: f32[128,256], index: 3, kind: output, shape index: {0}]   ;;  %s2553_s4 = inlined_call_operand.hbm [shape: f32[8,128], index: 4, kind: output, shape index: {1}]  }
   0x1   :  { %11 = vsyncpa [#allocation6], 0 }
   0x2   :  { %12 = vsyncpa [#allocation3], 0 }
   0x3   :  { %13 = vsyncpa [#allocation4], 0 }
   0x4   :  { %14 = vsyncpa [#allocation11], 0  ;;  %s29_s17 = sshll.u32 %s2550_s1, 4  ;;  %s1492_s20 = scalar_lea.hbm %s2549_s0, 16  ;;  %s30_s17 = int_to_ptr.vmem [resolvable:$true] %s29_s17 }
   0x5   :  { %p1493_p0 = scmp.ne.s32.totalorder %s2549_s0, %s1492_s20  ;;  %p1496_p1 = scmp.lt.u32.totalorder %s1492_s20, %s2549_s0 }
   0x7   :  { %p1498_p2 = pnand %p1496_p1, %p1493_p0 }
   0x9   :  { %1501 = shalt.err (!%p1498_p2)
}
   0xa   :  { %s1862_s25 = smov [#allocation2]   ;;  %s1502_s1 = scalar_lea.vmem %s30_s17, 16 }
   0xb   :  { %22 = dma.hbm_to_smem %s2549_s0, 16, %s1862_s25, [#allocation5]  }
   0xc   :  { %p1503_p3 = scmp.ne.s32.totalorder %s30_s17, %s1502_s1  ;;  %p1507_p4 = scmp.lt.s32.totalorder %s30_s17, %s30_s17 }
   0xd   :  { %p1508_p5 = scmp.lt.s32.totalorder %s1502_s1, %s1502_s1 }
   0xf   :  { %p1509_p6 = por %p1508_p5, %p1507_p4 }
  0x11   :  { %p1510_p7 = pnand %p1509_p6, %p1503_p3 }
  0x13   :  { %1513 = shalt.err (!%p1510_p7)
}
  0x14   :  { %s1863_s28 = smov [#allocation7]   ;;  %s1864_s29 = smov [#allocation8]  }
  0x15   :  { %32 = dma.vmem_to_smem %s30_s17, 16, %s1863_s28, [#allocation6]  }
  0x16   :  { %s38_s30 = sshll.u32 %s1864_s29, 4  ;;  %s1514_s7 = scalar_lea.hbm %s2551_s2, 4096  ;;  %s39_s30 = int_to_ptr.vmem [resolvable:$true] %s38_s30 }
  0x17   :  { %p1515_p8 = scmp.ne.s32.totalorder %s2551_s2, %s1514_s7  ;;  %p1518_p9 = scmp.lt.u32.totalorder %s1514_s7, %s2551_s2 }
  0x19   :  { %p1520_p10 = pnand %p1518_p9, %p1515_p8 }
  0x1b   :  { %1523 = shalt.err (!%p1520_p10)
}
  0x1c   :  { %s1524_s11 = scalar_lea.vmem %s39_s30, 4096  ;;  %p1529_p12 = scmp.lt.s32.totalorder %s39_s30, %s39_s30 }
  0x1d   :  { %p1525_p11 = scmp.ne.s32.totalorder %s39_s30, %s1524_s11  ;;  %p1530_p13 = scmp.lt.s32.totalorder %s1524_s11, %s1524_s11 }
  0x1f   :  { %p1531_p0 = por %p1530_p13, %p1529_p12 }
  0x21   :  { %p1532_p1 = pnand %p1531_p0, %p1525_p11 }
  0x23   :  { %1535 = shalt.err (!%p1532_p1)
}
  0x24   :  { %s1865_s12 = smov 256   ;;  %s1866_s13 = smov 16  }
  0x25   :  { %44 = dma.hbm_to_vmem [thread:$0]  %s2551_s2, 4096, %s39_s30, [#allocation3], %s1865_s12, %s1865_s12, %s1866_s13  }
  0x26   :  { %1716 = dma.done.wait [#allocation5], 16  }
  0x27   :  { %1717 = vsyncadd [#allocation5], 4294967280 }
  0x28   :  { %1718 = dma.done.wait [#allocation6], 16  }
  0x29   :  { %1719 = vsyncadd [#allocation6], 4294967280 }
  0x2a   :  { %1720 = dma.done.wait [#allocation3], 4096  }
  0x2b   :  { %1721 = vsyncadd [#allocation3], 4294963200 }
  0x2c   :  { %54 = sfence }
  0x2d   :  { %s58_s16 = sld [smem:[#allocation2]]  ;;  %v1933_v2 = vmov 0.0   ;;  %v1935_v3 = vmov 0.0   ;;  %v1937_v4 = vmov 0.0   ;;  %v1939_v5 = vmov 0.0   ;;  %s1965_s24 = smov 0  }
  0x2e   :  { %s59_s17 = sld [smem:[#allocation7]]  ;;  %v1941_v6 = vmov 0.0   ;;  %v1943_v7 = vmov 0.0   ;;  %v1945_v8 = vmov 0.0   ;;  %v1947_v9 = vmov 0.0  }
  0x2f   :  { %v1949_v10 = vmov 0.0   ;;  %v1951_v11 = vmov 0.0   ;;  %v1953_v12 = vmov 0.0   ;;  %v1955_v13 = vmov 0.0  }
  0x30   :  { %v1957_v14 = vmov 0.0   ;;  %v1959_v15 = vmov 0.0   ;;  %v1961_v16 = vmov 0.0   ;;  %v1963_v17 = vmov 0.0  }
  0x34   :  { %s1025_s18 = sadd.f32 -1e-06, %s59_s17 }
  0x36   :  { %s1924_s19 = smin.f32 %s1025_s18, %s58_s16 }
  0x37   :  { %s62_s20 = sadd.f32 1e-06, %s1924_s19 }
  0x39   :  { %s63_s21 = smax.f32 %s62_s20, %s59_s17 }
  0x3a   :  { %s1928_s22 = ssub.f32 %s63_s21, %s1924_s19 }
  0x3c   :  { %s65_s2 = sadd.f32 1e-06, %s1928_s22 }
  0x3e   :  { %v66_v0 = vstv %s65_s2 }
  0x3f   :  { %1356 = vrcp.f32 %v66_v0 }
  0x49   :  { %v1357_v1 = vpop.eup %1356 }
  0x4a   :  { %1071 = vpush %v1357_v1 }
  0x7b   :  { %s1931_s23 = spop %1071 }
  0x7c LB: > { %s1026_s25 = sshll.u32 %s1792_s24, 3  ;;  %v98_v19 = vstv %s1924_s19  ;;  %v100_v20 = vstv %s1931_s23  ;;  %s74_s24 = sadd.s32 1, %s1792_s24   ;;  %s1792_s24 = sphi %s1965_s24, %s74_s24   ;;  %v1788_v17 = vphi %v1963_v17, %v2586_v17   ;;  %v1784_v16 = vphi %v1961_v16, %v2585_v16   ;;  %v1780_v15 = vphi %v1959_v15, %v2584_v15   ;;  %v1776_v14 = vphi %v1957_v14, %v2583_v14   ;;  %v1772_v13 = vphi %v1955_v13, %v2582_v13   ;;  %v1768_v12 = vphi %v1953_v12, %v2581_v12   ;;  %v1764_v11 = vphi %v1951_v11, %v2580_v11   ;;  %v1760_v10 = vphi %v1949_v10, %v2579_v10   ;;  %v1756_v9 = vphi %v1947_v9, %v2578_v9   ;;  %v1752_v8 = vphi %v1945_v8, %v2577_v8   ;;  %v1748_v7 = vphi %v1943_v7, %v2576_v7   ;;  %v1744_v6 = vphi %v1941_v6, %v2575_v6   ;;  %v1740_v5 = vphi %v1939_v5, %v2574_v5   ;;  %v1736_v4 = vphi %v1937_v4, %v2573_v4   ;;  %v1732_v3 = vphi %v1935_v3, %v2572_v3   ;;  %v1728_v2 = vphi %v1933_v2, %v2571_v2  }
  0x7d   : > { %s2019_s26 = sshra.s32 %s1026_s25, 3  ;;  %p2086_p2 = scmp.ge.s32.totalorder %s74_s24, 16  }
  0x7e   : > { %s1067_s27 = sshll.u32 %s2019_s26, 4  ;;  %s2158_s30 = sld [smem:[#allocation7 + $0x1]] (%p2086_p2) }
  0x7f   : > { %s96_s1 = scalar_lea.vmem [#allocation8], %s1067_s27  ;;  %s266_s28 = scalar_lea.vmem [#allocation9], %s1067_s27 }
  0x80   : > { %v97_v18 = vld [vmem:[%s96_s1] sm:$0xff]  ;;  %s2160_s5 = sld [smem:[#allocation2 + $0x1]] (%p2086_p2)  ;;  %s2268_s14 = smov (%p2086_p2), 0  }
  0x81   : > { %v99_v21 = vsub.f32 %v97_v18, %v98_v19 }
  0x83   : > { %v101_v22 = vmul.f32 %v100_v20, %v99_v21 }
  0x84   :  { %s1047_s6 = sadd.f32 (%p2086_p2), -1e-06, %s2158_s30 }
  0x85   : > { %v102_v23 = vmax.f32 %v101_v22, 0.0 }
  0x86   :  { %s2198_s7 = smin.f32 (%p2086_p2), %s1047_s6, %s2160_s5 }
  0x87   : > { %v103_v24 = vmin.f32 %v102_v23, 1.0  ;;  %s465_s8 = sadd.f32 (%p2086_p2), 1e-06, %s2198_s7 }
  0x89   : > { %v104_v25 = vand.u32 2147483647, %v103_v24  ;;  %v1029_v26 = vadd.f32 -0.06666667, %v103_v24  ;;  %v1030_v27 = vadd.f32 -0.13333334, %v103_v24  ;;  %s466_s9 = smax.f32 (%p2086_p2), %s2158_s30, %s465_s8 }
  0x8a   : > { %v1031_v28 = vadd.f32 -0.2, %v103_v24  ;;  %v1032_v29 = vadd.f32 -0.26666668, %v103_v24  ;;  %v1033_v30 = vadd.f32 -0.33333334, %v103_v24  ;;  %s2213_s0 = ssub.f32 (%p2086_p2), %s466_s9, %s2198_s7 }
  0x8b   : > { %v105_v31 = vmul.f32 -100.0, %v104_v25  ;;  %v109_v32 = vand.u32 2147483647, %v1029_v26  ;;  %v115_v33 = vand.u32 2147483647, %v1030_v27  ;;  %v1043_v27 = vadd.f32 -1.0, %v103_v24 }
  0x8c   : > { %v121_v34 = vand.u32 2147483647, %v1031_v28  ;;  %v127_v35 = vand.u32 2147483647, %v1032_v29  ;;  %v133_v36 = vand.u32 2147483647, %v1033_v30 }
  0x8d   : > { %v106_v37 = vmul.f32 1.442695, %v105_v31  ;;  %v110_v38 = vmul.f32 -100.0, %v109_v32  ;;  %v116_v39 = vmul.f32 -100.0, %v115_v33  ;;  %v1034_v40 = vadd.f32 -0.4, %v103_v24 }
  0x8e   : > { %v122_v41 = vmul.f32 -100.0, %v121_v34  ;;  %v128_v42 = vmul.f32 -100.0, %v127_v35  ;;  %v134_v43 = vmul.f32 -100.0, %v133_v36  ;;  %v1035_v44 = vadd.f32 -0.46666667, %v103_v24 }
  0x8f   : > { %1358 = vpow2.f32 %v106_v37  ;;  %v111_v45 = vmul.f32 1.442695, %v110_v38  ;;  %v117_v46 = vmul.f32 1.442695, %v116_v39  ;;  %v139_v47 = vand.u32 2147483647, %v1034_v40 }
  0x90   : > { %v123_v48 = vmul.f32 1.442695, %v122_v41  ;;  %v129_v49 = vmul.f32 1.442695, %v128_v42  ;;  %v145_v51 = vand.u32 2147483647, %v1035_v44 }
  0x91   : > { %1360 = vpow2.f32 %v111_v45  ;;  %v140_v50 = vmul.f32 -100.0, %v139_v47  ;;  %v1036_v52 = vadd.f32 -0.53333336, %v103_v24  ;;  %v1037_v53 = vadd.f32 -0.6, %v103_v24 }
  0x92   : > { %1362 = vpow2.f32 %v117_v46  ;;  %v1038_v54 = vadd.f32 -0.6666667, %v103_v24  ;;  %v1039_v55 = vadd.f32 -0.73333335, %v103_v24  ;;  %v135_v56 = vmul.f32 1.442695, %v134_v43 }
  0x93   : > { %1364 = vpow2.f32 %v123_v48  ;;  %v146_v57 = vmul.f32 -100.0, %v145_v51  ;;  %v151_v58 = vand.u32 2147483647, %v1036_v52  ;;  %v157_v59 = vand.u32 2147483647, %v1037_v53 }
  0x94   : > { %v163_v60 = vand.u32 2147483647, %v1038_v54  ;;  %1366 = vpow2.f32 %v129_v49  ;;  %v141_v61 = vmul.f32 1.442695, %v140_v50  ;;  %v1040_v63 = vadd.f32 -0.8, %v103_v24 }
  0x95   : > { %v152_v62 = vmul.f32 -100.0, %v151_v58  ;;  %v169_v0 = vand.u32 2147483647, %v1039_v55  ;;  %1368 = vpow2.f32 %v135_v56  ;;  %v147_v1 = vmul.f32 1.442695, %v146_v57 }
  0x96   : > { %v158_v18 = vmul.f32 -100.0, %v157_v59  ;;  %v1041_v20 = vadd.f32 -0.8666667, %v103_v24  ;;  %v164_v21 = vmul.f32 -100.0, %v163_v60  ;;  %1370 = vpow2.f32 %v141_v61  ;;  %s468_s10 = sadd.f32 (%p2086_p2), 1e-06, %s2213_s0 }
  0x97   : > { %v153_v23 = vmul.f32 1.442695, %v152_v62  ;;  %v175_v25 = vand.u32 2147483647, %v1040_v63  ;;  %v1042_v26 = vadd.f32 -0.93333334, %v103_v24  ;;  %1372 = vpow2.f32 %v147_v1 }
  0x98   : > { %v159_v29 = vmul.f32 1.442695, %v158_v18  ;;  %v170_v30 = vmul.f32 -100.0, %v169_v0  ;;  %v181_v31 = vand.u32 2147483647, %v1041_v20 }
  0x99   : > { %v2028_v22 = vpop.eup %1358  ;;  %1374 = vpow2.f32 %v153_v23  ;;  %v165_v35 = vmul.f32 1.442695, %v164_v21  ;;  %v176_v36 = vmul.f32 -100.0, %v175_v25  ;;  %v187_v37 = vand.u32 2147483647, %v1042_v26 }
  0x9a   : > { %1376 = vpow2.f32 %v159_v29  ;;  %v171_v40 = vmul.f32 1.442695, %v170_v30  ;;  %v182_v41 = vmul.f32 -100.0, %v181_v31  ;;  %v193_v42 = vand.u32 2147483647, %v1043_v27 }
  0x9b   : > { %v1361_v28 = vpop.eup %1360  ;;  %1378 = vpow2.f32 %v165_v35  ;;  %v177_v44 = vmul.f32 1.442695, %v176_v36  ;;  %v188_v45 = vmul.f32 -100.0, %v187_v37 }
  0x9c   : > { %v1363_v32 = vpop.eup %1362  ;;  %v113_v33 = vadd.f32 %v1361_v28, %v2028_v22  ;;  %1380 = vpow2.f32 %v171_v40  ;;  %v183_v48 = vmul.f32 1.442695, %v182_v41  ;;  %v194_v49 = vmul.f32 -100.0, %v193_v42 }
  0x9d   : > { %v1365_v34 = vpop.eup %1364  ;;  %1382 = vpow2.f32 %v177_v44  ;;  %v189_v52 = vmul.f32 1.442695, %v188_v45 }
  0x9e   : > { %v119_v38 = vadd.f32 %v1363_v32, %v113_v33  ;;  %v1367_v39 = vpop.eup %1366  ;;  %1384 = vpow2.f32 %v183_v48  ;;  %v195_v55 = vmul.f32 1.442695, %v194_v49 }
  0x9f   : > { %v1369_v43 = vpop.eup %1368  ;;  %1386 = vpow2.f32 %v189_v52 }
  0xa0   : > { %v125_v24 = vadd.f32 %v1365_v34, %v119_v38  ;;  %v1371_v47 = vpop.eup %1370  ;;  %1388 = vpow2.f32 %v195_v55 }
  0xa1   : > { %v1373_v51 = vpop.eup %1372 }
  0xa2   : > { %v131_v46 = vadd.f32 %v1367_v39, %v125_v24 }
  0xa3   : > { %v1375_v54 = vpop.eup %1374 }
  0xa4   : > { %v137_v50 = vadd.f32 %v1369_v43, %v131_v46  ;;  %v1377_v57 = vpop.eup %1376 }
  0xa5   : > { %v1379_v59 = vpop.eup %1378 }
  0xa6   : > { %v143_v53 = vadd.f32 %v1371_v47, %v137_v50  ;;  %v1381_v61 = vpop.eup %1380 }
  0xa7   : > { %v1383_v63 = vpop.eup %1382 }
  0xa8   : > { %v149_v56 = vadd.f32 %v1373_v51, %v143_v53  ;;  %v1385_v1 = vpop.eup %1384 }
  0xa9   : > { %v1387_v20 = vpop.eup %1386 }
  0xaa   : > { %v155_v58 = vadd.f32 %v1375_v54, %v149_v56  ;;  %v1389_v23 = vpop.eup %1388 }
  0xac   : > { %v161_v60 = vadd.f32 %v1377_v57, %v155_v58 }
  0xae   : > { %v167_v62 = vadd.f32 %v1379_v59, %v161_v60 }
  0xb0   : > { %v173_v0 = vadd.f32 %v1381_v61, %v167_v62 }
  0xb2   : > { %v179_v18 = vadd.f32 %v1383_v63, %v173_v0 }
  0xb4   : > { %v185_v21 = vadd.f32 %v1385_v1, %v179_v18 }
  0xb6   : > { %v191_v25 = vadd.f32 %v1387_v20, %v185_v21 }
  0xb8   : > { %v197_v26 = vadd.f32 %v1389_v23, %v191_v25 }
  0xba   : > { %1390 = vrcp.f32 %v197_v26 }
  0xc4   : > { %v1391_v27 = vpop.eup %1390 }
  0xc5   : > { %v199_v29 = vmul.f32 %v1391_v27, %v197_v26 }
  0xc7   : > { %v200_v30 = vsub.f32 2.0, %v199_v29  ;;  %v262_v29 = vstv %s1928_s22 }
  0xc9   : > { %v201_v31 = vmul.f32 %v1391_v27, %v200_v30 }
  0xcb   : > { %v202_v33 = vmul.f32 %v2028_v22, %v201_v31  ;;  %v204_v35 = vmul.f32 %v1361_v28, %v201_v31  ;;  %v207_v36 = vmul.f32 %v1363_v32, %v201_v31  ;;  %v211_v37 = vmul.f32 %v1365_v34, %v201_v31 }
  0xcc   : > { %v215_v38 = vmul.f32 %v1367_v39, %v201_v31  ;;  %v219_v40 = vmul.f32 %v1369_v43, %v201_v31  ;;  %v223_v41 = vmul.f32 %v1371_v47, %v201_v31  ;;  %v227_v42 = vmul.f32 %v1373_v51, %v201_v31 }
  0xcd   : > { %v2033_v17 = vadd.f32 %v1788_v17, %v202_v33   ;;  %v2036_v16 = vadd.f32 %v1784_v16, %v204_v35   ;;  %v206_v45 = vmul.f32 0.06666667, %v204_v35  ;;  %v2039_v15 = vadd.f32 %v1780_v15, %v207_v36  }
  0xce   : > { %v209_v48 = vmul.f32 0.13333334, %v207_v36  ;;  %v2042_v14 = vadd.f32 %v1776_v14, %v211_v37   ;;  %v213_v28 = vmul.f32 0.2, %v211_v37  ;;  %v2045_v13 = vadd.f32 %v1772_v13, %v215_v38  }
  0xcf   : > { %v2554_v24 = vmov %v2033_v17  ;;  %v2555_v44 = vmov %v2036_v16  ;;  %v2556_v46 = vmov %v2039_v15  ;;  %v2048_v12 = vadd.f32 %v1768_v12, %v219_v40  }
  0xd0   : > { %v2557_v22 = vmov %v2042_v14  ;;  %v2558_v32 = vmov %v2045_v13  ;;  %v2051_v11 = vadd.f32 %v1764_v11, %v223_v41   ;;  %v210_v17 = vadd.f32 %v209_v48, %v206_v45 }
  0xd1   : > { %v2559_v34 = vmov %v2048_v12  ;;  %v217_v16 = vmul.f32 0.26666668, %v215_v38  ;;  %v2054_v10 = vadd.f32 %v1760_v10, %v227_v42   ;;  %v221_v15 = vmul.f32 0.33333334, %v219_v40 }
  0xd2   : > { %v2560_v39 = vmov %v2051_v11  ;;  %v231_v47 = vmul.f32 %v1375_v54, %v201_v31  ;;  %v235_v49 = vmul.f32 %v1377_v57, %v201_v31  ;;  %v214_v50 = vadd.f32 %v213_v28, %v210_v17 }
  0xd3   : > { %v2561_v43 = vmov %v2054_v10  ;;  %v225_v14 = vmul.f32 0.4, %v223_v41  ;;  %v239_v51 = vmul.f32 %v1379_v59, %v201_v31  ;;  %v243_v52 = vmul.f32 %v1381_v61, %v201_v31 }
  0xd4   : > { %v2057_v9 = vadd.f32 %v1756_v9, %v231_v47   ;;  %v2060_v8 = vadd.f32 %v1752_v8, %v235_v49   ;;  %v247_v12 = vmul.f32 %v1383_v63, %v201_v31  ;;  %v251_v11 = vmul.f32 %v1385_v1, %v201_v31 }
  0xd5   : > { %v218_v13 = vadd.f32 %v217_v16, %v214_v50  ;;  %v2063_v7 = vadd.f32 %v1748_v7, %v239_v51   ;;  %v2066_v6 = vadd.f32 %v1744_v6, %v243_v52   ;;  %v255_v10 = vmul.f32 %v1387_v20, %v201_v31 }
  0xd6   : > { %v2562_v53 = vmov %v2057_v9  ;;  %v2563_v55 = vmov %v2060_v8  ;;  %v2069_v5 = vadd.f32 %v1740_v5, %v247_v12   ;;  %v2072_v4 = vadd.f32 %v1736_v4, %v251_v11  }
  0xd7   : > { %v2564_v56 = vmov %v2063_v7  ;;  %v2565_v54 = vmov %v2066_v6  ;;  %v222_v9 = vadd.f32 %v221_v15, %v218_v13  ;;  %v229_v59 = vmul.f32 0.46666667, %v227_v42 }
  0xd8   : > { %v2566_v57 = vmov %v2069_v5  ;;  %v2567_v58 = vmov %v2072_v4  ;;  %v2075_v3 = vadd.f32 %v1732_v3, %v255_v10   ;;  %v259_v8 = vmul.f32 %v1389_v23, %v201_v31 }
  0xd9   : > { %v226_v61 = vadd.f32 %v225_v14, %v222_v9  ;;  %v233_v62 = vmul.f32 0.53333336, %v231_v47  ;;  %v237_v7 = vmul.f32 0.6, %v235_v49  ;;  %v241_v5 = vmul.f32 0.6666667, %v239_v51 }
  0xda   : > { %v2568_v60 = vmov %v2075_v3  ;;  %v2078_v2 = vadd.f32 %v1728_v2, %v259_v8   ;;  %v245_v4 = vmul.f32 0.73333335, %v243_v52  ;;  %v249_v20 = vmul.f32 0.8, %v247_v12 }
  0xdb   : > { %v230_v6 = vadd.f32 %v229_v59, %v226_v61  ;;  %v253_v25 = vmul.f32 0.8666667, %v251_v11  ;;  %v257_v23 = vmul.f32 0.93333334, %v255_v10  ;;  %v2578_v9 = vmov %v2562_v53 }
  0xdc   : > { %v2569_v63 = vmov %v2078_v2  ;;  %v2579_v10 = vmov %v2561_v43  ;;  %v2580_v11 = vmov %v2560_v39  ;;  %v2581_v12 = vmov %v2559_v34 }
  0xdd   : > { %v234_v0 = vadd.f32 %v233_v62, %v230_v6  ;;  %v2575_v6 = vmov %v2565_v54  ;;  %v2582_v13 = vmov %v2558_v32  ;;  %v2583_v14 = vmov %v2557_v22 }
  0xde   : > { %v2584_v15 = vmov %v2556_v46  ;;  %v2585_v16 = vmov %v2555_v44  ;;  %v2586_v17 = vmov %v2554_v24  ;;  %v280_v33 = vrot.slane (%p2086_p2), %v2555_v44, 4 }
  0xdf   : > { %v238_v1 = vadd.f32 %v237_v7, %v234_v0  ;;  %v2576_v7 = vmov %v2564_v56  ;;  %v292_v35 = vrot.slane (%p2086_p2), %v2556_v46, 4  ;;  %v304_v36 = vrot.slane (%p2086_p2), %v2557_v22, 4 }
  0xe0   :  { %v316_v37 = vrot.slane (%p2086_p2), %v2558_v32, 4  ;;  %v328_v38 = vrot.slane (%p2086_p2), %v2559_v34, 4  ;;  %v340_v40 = vrot.slane (%p2086_p2), %v2560_v39, 4  ;;  %v352_v41 = vrot.slane (%p2086_p2), %v2561_v43, 4 }
  0xe1   : > { %v242_v18 = vadd.f32 %v241_v5, %v238_v1  ;;  %v2574_v5 = vmov %v2566_v57  ;;  %v281_v45 = vadd.f32 (%p2086_p2), %v280_v33, %v2555_v44  ;;  %v293_v48 = vadd.f32 (%p2086_p2), %v292_v35, %v2556_v46 }
  0xe2   :  { %v305_v28 = vadd.f32 (%p2086_p2), %v304_v36, %v2557_v22  ;;  %v317_v17 = vadd.f32 (%p2086_p2), %v316_v37, %v2558_v32  ;;  %v329_v16 = vadd.f32 (%p2086_p2), %v328_v38, %v2559_v34  ;;  %v341_v15 = vadd.f32 (%p2086_p2), %v340_v40, %v2560_v39 }
  0xe3   : > { %v246_v21 = vadd.f32 %v245_v4, %v242_v18  ;;  %v2573_v4 = vmov %v2567_v58  ;;  %v353_v47 = vadd.f32 (%p2086_p2), %v352_v41, %v2561_v43  ;;  %v282_v50 = vrot.slane (%p2086_p2), %v281_v45, 2 }
  0xe4   :  { %v294_v14 = vrot.slane (%p2086_p2), %v293_v48, 2  ;;  %v306_v51 = vrot.slane (%p2086_p2), %v305_v28, 2  ;;  %v318_v52 = vrot.slane (%p2086_p2), %v317_v17, 2  ;;  %v342_v12 = vrot.slane (%p2086_p2), %v341_v15, 2 }
  0xe5   : > { %v250_v3 = vadd.f32 %v249_v20, %v246_v21  ;;  %v354_v44 = vrot.slane (%p2086_p2), %v353_v47, 2  ;;  %v283_v22 = vadd.f32 (%p2086_p2), %v282_v50, %v281_v45  ;;  %v376_v45 = vrot.slane (%p2086_p2), %v2563_v55, 4 }
  0xe6   :  { %v295_v11 = vadd.f32 (%p2086_p2), %v294_v14, %v293_v48  ;;  %v307_v32 = vadd.f32 (%p2086_p2), %v306_v51, %v305_v28  ;;  %v319_v13 = vadd.f32 (%p2086_p2), %v318_v52, %v317_v17  ;;  %v343_v10 = vadd.f32 (%p2086_p2), %v342_v12, %v341_v15 }
  0xe7   : > { %v254_v26 = vadd.f32 %v253_v25, %v250_v3  ;;  %v2572_v3 = vmov %v2568_v60  ;;  %v355_v39 = vadd.f32 (%p2086_p2), %v354_v44, %v353_v47  ;;  %v284_v43 = vrot.slane (%p2086_p2), %v283_v22, 1 }
  0xe8   :  { %v296_v59 = vrot.slane (%p2086_p2), %v295_v11, 1  ;;  %v320_v61 = vrot.slane (%p2086_p2), %v319_v13, 1  ;;  %v344_v6 = vrot.slane (%p2086_p2), %v343_v10, 1  ;;  %v388_v48 = vrot.slane (%p2086_p2), %v2564_v56, 4 }
  0xe9   : > { %v258_v27 = vadd.f32 %v257_v23, %v254_v26  ;;  %v356_v7 = vrot.slane (%p2086_p2), %v355_v39, 1  ;;  %v285_v5 = vadd.f32 (%p2086_p2), %v284_v43, %v283_v22  ;;  %v400_v28 = vrot.slane (%p2086_p2), %v2565_v54, 4 }
  0xea   :  { %v297_v1 = vadd.f32 (%p2086_p2), %v296_v59, %v295_v11  ;;  %v321_v18 = vadd.f32 (%p2086_p2), %v320_v61, %v319_v13  ;;  %v345_v21 = vadd.f32 (%p2086_p2), %v344_v6, %v343_v10  ;;  %v424_v15 = vrot.slane (%p2086_p2), %v2567_v58, 4 }
  0xeb   : > { %v261_v30 = vadd.f32 %v259_v8, %v258_v27  ;;  %v2577_v8 = vmov %v2563_v55  ;;  %73 = sbr.rel (!%p2086_p2) target bundleno = 124 (0x7c), region = 70  ;;  %v357_v25 = vadd.f32 (%p2086_p2), %v356_v7, %v355_v39  ;;  %v2164_v23 = vmul.f32 (%p2086_p2), 6.1035156e-05, %v285_v5 }
  0xec   :  { %v308_v8 = vrot.slane (%p2086_p2), %v307_v32, 1  ;;  %v2166_v26 = vmul.f32 (%p2086_p2), 6.1035156e-05, %v297_v1  ;;  %v377_v47 = vadd.f32 (%p2086_p2), %v376_v45, %v2563_v55  ;;  %v401_v50 = vadd.f32 (%p2086_p2), %v400_v28, %v2565_v54 }
  0xed   : > { %v263_v31 = vmul.f32 %v262_v29, %v261_v30  ;;  %v2170_v29 = vmul.f32 (%p2086_p2), 6.1035156e-05, %v321_v18  ;;  %v287_v33 = vadd.f32 (%p2086_p2), 1e-06, %v2164_v23  ;;  %v448_v39 = vrot.slane (%p2086_p2), %v2569_v63, 4 }
  0xee   :  { %v309_v4 = vadd.f32 (%p2086_p2), %v308_v8, %v307_v32  ;;  %v299_v35 = vadd.f32 (%p2086_p2), 1e-06, %v2166_v26  ;;  %v378_v52 = vrot.slane (%p2086_p2), %v377_v47, 2  ;;  %v402_v12 = vrot.slane (%p2086_p2), %v401_v50, 2 }
  0xef   : > { %v264_v2 = vadd.f32 %v263_v31, %v98_v19  ;;  %v268_v19 = vrot.slane (%p2086_p2), %v2554_v24, 4  ;;  %v2174_v31 = vmul.f32 (%p2086_p2), 6.1035156e-05, %v345_v21  ;;  %v323_v37 = vadd.f32 (%p2086_p2), 1e-06, %v2170_v29 }
  0xf0   :  { %v2168_v27 = vmul.f32 (%p2086_p2), 6.1035156e-05, %v309_v4  ;;  %v403_v22 = vadd.f32 (%p2086_p2), %v402_v12, %v401_v50 }
  0xf1   : > { %267 = vst [vmem:[%s266_s28] sm:$0xff] %v264_v2  ;;  %v2571_v2 = vmov %v2569_v63  ;;  %v269_v42 = vadd.f32 (%p2086_p2), %v268_v19, %v2554_v24  ;;  %v330_v24 = vrot.slane (%p2086_p2), %v329_v16, 2  ;;  %v347_v40 = vadd.f32 (%p2086_p2), 1e-06, %v2174_v31 }
  0xf2   :  { %v2176_v2 = vmul.f32 6.1035156e-05, %v357_v25  ;;  %v311_v36 = vadd.f32 1e-06, %v2168_v27  ;;  %v404_v10 = vrot.slane %v403_v22, 1 }
  0xf3   :  { %v270_v49 = vrot.slane %v269_v42, 2  ;;  %v331_v34 = vadd.f32 %v330_v24, %v329_v16  ;;  %v412_v16 = vrot.slane %v2566_v57, 4 }
  0xf4   :  { %v359_v41 = vadd.f32 1e-06, %v2176_v2  ;;  %v405_v5 = vadd.f32 %v404_v10, %v403_v22 }
  0xf5   :  { %v271_v46 = vadd.f32 %v270_v49, %v269_v42  ;;  %v332_v62 = vrot.slane %v331_v34, 1  ;;  %v364_v42 = vrot.slane %v2562_v53, 4  ;;  %v389_v49 = vadd.f32 %v388_v48, %v2564_v56 }
  0xf6   :  { %v413_v51 = vadd.f32 %v412_v16, %v2566_v57  ;;  %v379_v56 = vadd.f32 %v378_v52, %v377_v47  ;;  %v436_v57 = vrot.slane %v2568_v60, 4 }
  0xf7   :  { %v272_v9 = vrot.slane %v271_v46, 1  ;;  %v333_v20 = vadd.f32 %v332_v62, %v331_v34  ;;  %v365_v17 = vadd.f32 %v364_v42, %v2562_v53  ;;  %v425_v53 = vadd.f32 %v424_v15, %v2567_v58 }
  0xf8   :  { %v390_v24 = vrot.slane %v389_v49, 2  ;;  %v414_v55 = vrot.slane %v413_v51, 2  ;;  %v380_v58 = vrot.slane %v379_v56, 1  ;;  %v437_v61 = vadd.f32 %v436_v57, %v2568_v60 }
  0xf9   :  { %v273_v0 = vadd.f32 %v272_v9, %v271_v46  ;;  %v2172_v30 = vmul.f32 6.1035156e-05, %v333_v20  ;;  %v366_v14 = vrot.slane %v365_v17, 2  ;;  %v426_v46 = vrot.slane %v425_v53, 2 }
  0xfa   :  { %v391_v54 = vadd.f32 %v390_v24, %v389_v49  ;;  %v415_v32 = vadd.f32 %v414_v55, %v413_v51  ;;  %v381_v7 = vadd.f32 %v380_v58, %v379_v56 }
  0xfb   :  { %v2162_v3 = vmul.f32 6.1035156e-05, %v273_v0  ;;  %v335_v38 = vadd.f32 1e-06, %v2172_v30  ;;  %v367_v44 = vadd.f32 %v366_v14, %v365_v17  ;;  %v427_v13 = vadd.f32 %v426_v46, %v425_v53 }
  0xfc   :  { %v392_v34 = vrot.slane %v391_v54, 1  ;;  %v416_v59 = vrot.slane %v415_v32, 1 }
  0xfd   :  { %v275_v19 = vadd.f32 1e-06, %v2162_v3  ;;  %v368_v11 = vrot.slane %v367_v44, 1  ;;  %v428_v8 = vrot.slane %v427_v13, 1 }
  0xfe   :  { %v393_v0 = vadd.f32 %v392_v34, %v391_v54  ;;  %v417_v20 = vadd.f32 %v416_v59, %v415_v32  ;;  %v469_v54 = vstv %s468_s10 }
  0xff   :  { %1392 = vlog2.f32 %v275_v19  ;;  %v369_v43 = vadd.f32 %v368_v11, %v367_v44  ;;  %v429_v21 = vadd.f32 %v428_v8, %v427_v13  ;;  %v449_v44 = vadd.f32 %v448_v39, %v2569_v63 }
 0x100   :  { %1394 = vlog2.f32 %v287_v33  ;;  %v418_v53 = vmul.f32 6.1035156e-05, %v417_v20 }
 0x101   :  { %1396 = vlog2.f32 %v299_v35  ;;  %v2207_v18 = vmul.f32 6.1035156e-05, %v369_v43  ;;  %v382_v35 = vmul.f32 6.1035156e-05, %v381_v7  ;;  %v430_v52 = vmul.f32 6.1035156e-05, %v429_v21 }
 0x102   :  { %1398 = vlog2.f32 %v311_v36  ;;  %v2210_v36 = vmul.f32 6.1035156e-05, %v393_v0  ;;  %v419_v46 = vadd.f32 1e-06, %v418_v53  ;;  %v450_v32 = vrot.slane %v449_v44, 2 }
 0x103   :  { %1400 = vlog2.f32 %v323_v37  ;;  %v431_v56 = vadd.f32 1e-06, %v430_v52 }
 0x104   :  { %1402 = vlog2.f32 %v335_v38  ;;  %v395_v28 = vadd.f32 1e-06, %v2210_v36  ;;  %v451_v58 = vadd.f32 %v450_v32, %v449_v44  ;;  %v2256_v44 = vmov 0.0  }
 0x105   :  { %1404 = vlog2.f32 %v347_v40  ;;  %v371_v40 = vadd.f32 1e-06, %v2207_v18 }
 0x106   :  { %1406 = vlog2.f32 %v359_v41  ;;  %v2217_v41 = vmul.f32 6.1035156e-05, %v405_v5  ;;  %v452_v63 = vrot.slane %v451_v58, 1 }
 0x107   :  { %1408 = vlog2.f32 %v371_v40 }
 0x108   :  { %v407_v50 = vadd.f32 1e-06, %v2217_v41 }
 0x109   :  { %v1393_v9 = vpop.eup %1392 }
 0x10a   :  { %v1395_v62 = vpop.eup %1394  ;;  %v277_v6 = vmul.f32 0.6931472, %v1393_v9 }
 0x10b   :  { %v1397_v1 = vpop.eup %1396  ;;  %v289_v4 = vmul.f32 0.6931472, %v1395_v62 }
 0x10c   :  { %v1399_v25 = vpop.eup %1398  ;;  %v278_v19 = vmul.f32 %v277_v6, %v2162_v3  ;;  %v301_v33 = vmul.f32 0.6931472, %v1397_v1  ;;  %v383_v3 = vadd.f32 1e-06, %v382_v35 }
 0x10d   :  { %v1401_v60 = vpop.eup %1400  ;;  %v290_v37 = vmul.f32 %v289_v4, %v2164_v23  ;;  %v313_v38 = vmul.f32 0.6931472, %v1399_v25 }
 0x10e   :  { %v1403_v42 = vpop.eup %1402  ;;  %v302_v45 = vmul.f32 %v301_v33, %v2166_v26  ;;  %v325_v48 = vmul.f32 0.6931472, %v1401_v60  ;;  %1410 = vlog2.f32 %v383_v3 }
 0x10f   :  { %v1405_v17 = vpop.eup %1404  ;;  %v291_v16 = vadd.f32 %v290_v37, %v278_v19  ;;  %v314_v15 = vmul.f32 %v313_v38, %v2168_v27  ;;  %v337_v47 = vmul.f32 0.6931472, %v1403_v42  ;;  %1412 = vlog2.f32 %v395_v28 }
 0x110   :  { %v1407_v23 = vpop.eup %1406  ;;  %v349_v49 = vmul.f32 0.6931472, %v1405_v17  ;;  %v326_v51 = vmul.f32 %v325_v48, %v2170_v29  ;;  %1414 = vlog2.f32 %v407_v50  ;;  %v438_v27 = vrot.slane %v437_v61, 2 }
 0x111   :  { %v303_v14 = vadd.f32 %v302_v45, %v291_v16  ;;  %v361_v26 = vmul.f32 0.6931472, %v1407_v23  ;;  %v338_v12 = vmul.f32 %v337_v47, %v2172_v30  ;;  %1416 = vrcp.f32 %v469_v54  ;;  %v1409_v30 = vpop.eup %1408 }
 0x112   :  { %v350_v55 = vmul.f32 %v349_v49, %v2174_v31  ;;  %v439_v11 = vadd.f32 %v438_v27, %v437_v61  ;;  %1418 = vlog2.f32 %v419_v46  ;;  %v373_v31 = vmul.f32 0.6931472, %v1409_v30 }
 0x113   :  { %v315_v24 = vadd.f32 %v314_v15, %v303_v14  ;;  %v362_v29 = vmul.f32 %v361_v26, %v2176_v2  ;;  %1420 = vlog2.f32 %v431_v56  ;;  %v453_v61 = vadd.f32 %v452_v63, %v451_v58 }
 0x114   :  { %v440_v57 = vrot.slane %v439_v11, 1  ;;  %v374_v6 = vmul.f32 %v373_v31, %v2207_v18  ;;  %v2238_v50 = vmov 0.0   ;;  %v2240_v14 = vmov 0.0  }
 0x115   :  { %v327_v22 = vadd.f32 %v326_v51, %v315_v24  ;;  %v454_v1 = vmul.f32 6.1035156e-05, %v453_v61  ;;  %v2242_v51 = vmov 0.0   ;;  %v2244_v26 = vmov 0.0  }
 0x116   :  { %v441_v10 = vadd.f32 %v440_v57, %v439_v11  ;;  %v2250_v24 = vmov 0.0   ;;  %v2254_v27 = vmov 0.0   ;;  %v2260_v46 = vmov 0.0  }
 0x117   :  { %v339_v13 = vadd.f32 %v338_v12, %v327_v22  ;;  %v455_v25 = vadd.f32 1e-06, %v454_v1  ;;  %v2252_v12 = vmov 0.0   ;;  %v2262_v56 = vmov 0.0  }
 0x118   :  { %v1411_v39 = vpop.eup %1410  ;;  %v442_v8 = vmul.f32 6.1035156e-05, %v441_v10  ;;  %v2264_v54 = vmov 0.0   ;;  %v2266_v22 = vmov 0.0  }
 0x119   :  { %v351_v34 = vadd.f32 %v350_v55, %v339_v13  ;;  %v1413_v9 = vpop.eup %1412  ;;  %v385_v59 = vmul.f32 0.6931472, %v1411_v39  ;;  %v2258_v55 = vmov 0.0  }
 0x11a   :  { %v1415_v62 = vpop.eup %1414  ;;  %v397_v2 = vmul.f32 0.6931472, %v1413_v9  ;;  %v443_v5 = vadd.f32 1e-06, %v442_v8 }
 0x11b   :  { %v363_v43 = vadd.f32 %v362_v29, %v351_v34  ;;  %v386_v7 = vmul.f32 %v385_v59, %v382_v35  ;;  %v409_v0 = vmul.f32 0.6931472, %v1415_v62  ;;  %v1417_v21 = vpop.eup %1416 }
 0x11c   :  { %v398_v20 = vmul.f32 %v397_v2, %v2210_v36  ;;  %1422 = vlog2.f32 %v443_v5  ;;  %v1419_v19 = vpop.eup %1418  ;;  %1073 = vpush %v1417_v21 }
 0x11d   :  { %v375_v4 = vadd.f32 %v374_v6, %v363_v43  ;;  %v410_v60 = vmul.f32 %v409_v0, %v2217_v41  ;;  %v1421_v37 = vpop.eup %1420  ;;  %v421_v38 = vmul.f32 0.6931472, %v1419_v19  ;;  %1424 = vlog2.f32 %v455_v25 }
 0x11e   :  { %v433_v40 = vmul.f32 0.6931472, %v1421_v37  ;;  %v2236_v41 = vmov 0.0  }
 0x11f   :  { %v387_v33 = vadd.f32 %v386_v7, %v375_v4  ;;  %v422_v35 = vmul.f32 %v421_v38, %v418_v53  ;;  %v2246_v53 = vmov 0.0  }
 0x120   :  { %v434_v48 = vmul.f32 %v433_v40, %v430_v52  ;;  %v2248_v52 = vmov 0.0  }
 0x121   :  { %v399_v18 = vadd.f32 %v398_v20, %v387_v33 }
 0x123   :  { %v411_v42 = vadd.f32 %v410_v60, %v399_v18 }
 0x125   :  { %v423_v45 = vadd.f32 %v422_v35, %v411_v42 }
 0x126   :  { %v1423_v3 = vpop.eup %1422 }
 0x127   :  { %v435_v28 = vadd.f32 %v434_v48, %v423_v45  ;;  %v445_v36 = vmul.f32 0.6931472, %v1423_v3  ;;  %v1425_v17 = vpop.eup %1424 }
 0x128   :  { %v457_v15 = vmul.f32 0.6931472, %v1425_v17 }
 0x129   :  { %v446_v16 = vmul.f32 %v445_v36, %v442_v8 }
 0x12a   :  { %v458_v23 = vmul.f32 %v457_v15, %v454_v1 }
 0x12b   :  { %v447_v47 = vadd.f32 %v446_v16, %v435_v28 }
 0x12d   :  { %v2232_v49 = vadd.f32 %v458_v23, %v447_v47 }
 0x14d   :  { %s2234_s11 = spop %1073 }
 0x14e LB: > { %s1048_s15 = sshll.u32 %s1860_s14, 3  ;;  %v501_v32 = vstv %s2198_s7  ;;  %v503_v29 = vstv %s2234_s11  ;;  %s477_s14 = sadd.s32 1, %s1860_s14   ;;  %s1860_s14 = sphi %s2268_s14, %s477_s14   ;;  %v1856_v22 = vphi %v2266_v22, %v2619_v22   ;;  %v1852_v54 = vphi %v2264_v54, %v2618_v54   ;;  %v1848_v56 = vphi %v2262_v56, %v2617_v56   ;;  %v1844_v46 = vphi %v2260_v46, %v2616_v46   ;;  %v1840_v55 = vphi %v2258_v55, %v2615_v55   ;;  %v1836_v44 = vphi %v2256_v44, %v2614_v44   ;;  %v1832_v27 = vphi %v2254_v27, %v2613_v27   ;;  %v1828_v12 = vphi %v2252_v12, %v2612_v12   ;;  %v1824_v24 = vphi %v2250_v24, %v2611_v24   ;;  %v1820_v52 = vphi %v2248_v52, %v2610_v52   ;;  %v1816_v53 = vphi %v2246_v53, %v2609_v53   ;;  %v1812_v26 = vphi %v2244_v26, %v2608_v26   ;;  %v1808_v51 = vphi %v2242_v51, %v2607_v51   ;;  %v1804_v14 = vphi %v2240_v14, %v2606_v14   ;;  %v1800_v50 = vphi %v2238_v50, %v2605_v50   ;;  %v1796_v41 = vphi %v2236_v41, %v2604_v41  }
 0x14f   : > { %s2322_s16 = sshra.s32 %s1048_s15, 3  ;;  %p2389_p3 = scmp.ge.s32.totalorder %s477_s14, 16  }
 0x150   : > { %s1069_s17 = sshll.u32 %s2322_s16, 4  ;;  %vm863_vm0 = vcmask (%p2389_p3), 1040384   ;;  %s1867_s21 = smov (%p2389_p3), [#allocation9]  }
 0x151   : > { %s499_s18 = scalar_lea.vmem [#allocation8], %s1069_s17  ;;  %s669_s19 = scalar_lea.vmem [#allocation9], %s1069_s17 }
 0x152   : > { %v500_v11 = vld [vmem:[%s499_s18 + $0x8] sm:$0xff]  ;;  %s883_s22 = sshll.u32 (%p2389_p3), %s1867_s21, 4  ;;  %s884_s22 = int_to_ptr.vmem [resolvable:$true] %s883_s22 }
 0x153   : > { %v502_v13 = vsub.f32 %v500_v11, %v501_v32  ;;  %s1536_s2 = scalar_lea.vmem (%p2389_p3), %s884_s22, 4096  ;;  %p1541_p5 = scmp.lt.s32.totalorder (%p2389_p3), %s884_s22, %s884_s22 }
 0x154   :  { %p1537_p4 = scmp.ne.s32.totalorder (%p2389_p3), %s884_s22, %s1536_s2  ;;  %p1542_p6 = scmp.lt.s32.totalorder (%p2389_p3), %s1536_s2, %s1536_s2 }
 0x155   : > { %v504_v57 = vmul.f32 %v503_v29, %v502_v13 }
 0x156   :  { %p1543_p7 = por (%p2389_p3), %p1542_p6, %p1541_p5 }
 0x157   : > { %v505_v58 = vmax.f32 %v504_v57, 0.0 }
 0x158   :  { %p1544_p8 = pnand (%p2389_p3), %p1543_p7, %p1537_p4 }
 0x159   : > { %v506_v30 = vmin.f32 %v505_v58, 1.0 }
 0x15b   : > { %v507_v34 = vand.u32 2147483647, %v506_v30  ;;  %v1051_v10 = vadd.f32 -0.06666667, %v506_v30  ;;  %v1052_v63 = vadd.f32 -0.13333334, %v506_v30 }
 0x15c   : > { %v1053_v39 = vadd.f32 -0.2, %v506_v30  ;;  %v1054_v31 = vadd.f32 -0.26666668, %v506_v30  ;;  %v1055_v9 = vadd.f32 -0.33333334, %v506_v30 }
 0x15d   : > { %v508_v43 = vmul.f32 -100.0, %v507_v34  ;;  %v512_v59 = vand.u32 2147483647, %v1051_v10  ;;  %v518_v8 = vand.u32 2147483647, %v1052_v63 }
 0x15e   : > { %v524_v61 = vand.u32 2147483647, %v1053_v39  ;;  %v530_v62 = vand.u32 2147483647, %v1054_v31  ;;  %v536_v6 = vand.u32 2147483647, %v1055_v9 }
 0x15f   : > { %v509_v2 = vmul.f32 1.442695, %v508_v43  ;;  %v513_v7 = vmul.f32 -100.0, %v512_v59  ;;  %v519_v0 = vmul.f32 -100.0, %v518_v8  ;;  %v1056_v5 = vadd.f32 -0.4, %v506_v30 }
 0x160   : > { %v525_v1 = vmul.f32 -100.0, %v524_v61  ;;  %v531_v4 = vmul.f32 -100.0, %v530_v62  ;;  %v537_v20 = vmul.f32 -100.0, %v536_v6  ;;  %v1057_v21 = vadd.f32 -0.46666667, %v506_v30 }
 0x161   : > { %1426 = vpow2.f32 %v509_v2  ;;  %v514_v25 = vmul.f32 1.442695, %v513_v7  ;;  %v520_v19 = vmul.f32 1.442695, %v519_v0  ;;  %v542_v33 = vand.u32 2147483647, %v1056_v5 }
 0x162   : > { %v526_v60 = vmul.f32 1.442695, %v525_v1  ;;  %v532_v37 = vmul.f32 1.442695, %v531_v4  ;;  %v548_v18 = vand.u32 2147483647, %v1057_v21 }
 0x163   : > { %1428 = vpow2.f32 %v514_v25  ;;  %v543_v38 = vmul.f32 -100.0, %v542_v33  ;;  %v1058_v40 = vadd.f32 -0.53333336, %v506_v30  ;;  %v1059_v35 = vadd.f32 -0.6, %v506_v30 }
 0x164   : > { %1430 = vpow2.f32 %v520_v19  ;;  %v1060_v42 = vadd.f32 -0.6666667, %v506_v30  ;;  %v1061_v45 = vadd.f32 -0.73333335, %v506_v30  ;;  %v538_v48 = vmul.f32 1.442695, %v537_v20 }
 0x165   : > { %1432 = vpow2.f32 %v526_v60  ;;  %v549_v3 = vmul.f32 -100.0, %v548_v18  ;;  %v554_v28 = vand.u32 2147483647, %v1058_v40  ;;  %v560_v36 = vand.u32 2147483647, %v1059_v35 }
 0x166   : > { %v566_v17 = vand.u32 2147483647, %v1060_v42  ;;  %1434 = vpow2.f32 %v532_v37  ;;  %v544_v16 = vmul.f32 1.442695, %v543_v38  ;;  %v1062_v47 = vadd.f32 -0.8, %v506_v30 }
 0x167   : > { %v555_v15 = vmul.f32 -100.0, %v554_v28  ;;  %v572_v23 = vand.u32 2147483647, %v1061_v45  ;;  %1436 = vpow2.f32 %v538_v48  ;;  %v550_v11 = vmul.f32 1.442695, %v549_v3 }
 0x168   : > { %v561_v29 = vmul.f32 -100.0, %v560_v36  ;;  %v1063_v13 = vadd.f32 -0.8666667, %v506_v30  ;;  %v567_v57 = vmul.f32 -100.0, %v566_v17  ;;  %1438 = vpow2.f32 %v544_v16 }
 0x169   : > { %v556_v34 = vmul.f32 1.442695, %v555_v15  ;;  %v578_v10 = vand.u32 2147483647, %v1062_v47  ;;  %v1064_v63 = vadd.f32 -0.93333334, %v506_v30  ;;  %1440 = vpow2.f32 %v550_v11 }
 0x16a   : > { %v1065_v39 = vadd.f32 -1.0, %v506_v30  ;;  %v562_v9 = vmul.f32 1.442695, %v561_v29  ;;  %v573_v43 = vmul.f32 -100.0, %v572_v23  ;;  %v584_v59 = vand.u32 2147483647, %v1063_v13 }
 0x16b   : > { %v2331_v58 = vpop.eup %1426  ;;  %1442 = vpow2.f32 %v556_v34  ;;  %v568_v6 = vmul.f32 1.442695, %v567_v57  ;;  %v579_v2 = vmul.f32 -100.0, %v578_v10  ;;  %v590_v7 = vand.u32 2147483647, %v1064_v63 }
 0x16c   : > { %1444 = vpow2.f32 %v562_v9  ;;  %v574_v1 = vmul.f32 1.442695, %v573_v43  ;;  %v585_v4 = vmul.f32 -100.0, %v584_v59  ;;  %v596_v20 = vand.u32 2147483647, %v1065_v39 }
 0x16d   : > { %v1429_v31 = vpop.eup %1428  ;;  %1446 = vpow2.f32 %v568_v6  ;;  %v580_v25 = vmul.f32 1.442695, %v579_v2  ;;  %v591_v19 = vmul.f32 -100.0, %v590_v7 }
 0x16e   : > { %v1431_v8 = vpop.eup %1430  ;;  %v516_v61 = vadd.f32 %v1429_v31, %v2331_v58  ;;  %1448 = vpow2.f32 %v574_v1  ;;  %v586_v37 = vmul.f32 1.442695, %v585_v4  ;;  %v597_v38 = vmul.f32 -100.0, %v596_v20 }
 0x16f   : > { %v1433_v62 = vpop.eup %1432  ;;  %1450 = vpow2.f32 %v580_v25  ;;  %v592_v35 = vmul.f32 1.442695, %v591_v19 }
 0x170   : > { %v522_v0 = vadd.f32 %v1431_v8, %v516_v61  ;;  %v1435_v5 = vpop.eup %1434  ;;  %1452 = vpow2.f32 %v586_v37  ;;  %v598_v48 = vmul.f32 1.442695, %v597_v38 }
 0x171   : > { %v1437_v21 = vpop.eup %1436  ;;  %1454 = vpow2.f32 %v592_v35 }
 0x172   : > { %v528_v30 = vadd.f32 %v1433_v62, %v522_v0  ;;  %v1439_v60 = vpop.eup %1438  ;;  %1456 = vpow2.f32 %v598_v48 }
 0x173   : > { %v1441_v40 = vpop.eup %1440 }
 0x174   : > { %v534_v33 = vadd.f32 %v1435_v5, %v528_v30 }
 0x175   : > { %v1443_v45 = vpop.eup %1442 }
 0x176   : > { %v540_v18 = vadd.f32 %v1437_v21, %v534_v33  ;;  %v1445_v28 = vpop.eup %1444 }
 0x177   : > { %v1447_v17 = vpop.eup %1446 }
 0x178   : > { %v546_v42 = vadd.f32 %v1439_v60, %v540_v18  ;;  %v1449_v15 = vpop.eup %1448 }
 0x179   : > { %v1451_v23 = vpop.eup %1450 }
 0x17a   : > { %v552_v3 = vadd.f32 %v1441_v40, %v546_v42  ;;  %v1453_v29 = vpop.eup %1452 }
 0x17b   : > { %v1455_v57 = vpop.eup %1454 }
 0x17c   : > { %v558_v36 = vadd.f32 %v1443_v45, %v552_v3  ;;  %v1457_v10 = vpop.eup %1456 }
 0x17e   : > { %v564_v16 = vadd.f32 %v1445_v28, %v558_v36 }
 0x180   : > { %v570_v47 = vadd.f32 %v1447_v17, %v564_v16 }
 0x182   : > { %v576_v11 = vadd.f32 %v1449_v15, %v570_v47 }
 0x184   : > { %v582_v13 = vadd.f32 %v1451_v23, %v576_v11 }
 0x186   : > { %v588_v34 = vadd.f32 %v1453_v29, %v582_v13 }
 0x188   : > { %v594_v63 = vadd.f32 %v1455_v57, %v588_v34 }
 0x18a   : > { %v600_v39 = vadd.f32 %v1457_v10, %v594_v63 }
 0x18c   : > { %1458 = vrcp.f32 %v600_v39 }
 0x196   : > { %v1459_v9 = vpop.eup %1458 }
 0x197   : > { %v602_v43 = vmul.f32 %v1459_v9, %v600_v39 }
 0x199   : > { %v603_v59 = vsub.f32 2.0, %v602_v43 }
 0x19b   : > { %v604_v61 = vmul.f32 %v1459_v9, %v603_v59  ;;  %v665_v59 = vstv %s2213_s0 }
 0x19d   : > { %v605_v6 = vmul.f32 %v2331_v58, %v604_v61  ;;  %v607_v2 = vmul.f32 %v1429_v31, %v604_v61  ;;  %v610_v7 = vmul.f32 %v1431_v8, %v604_v61  ;;  %v614_v0 = vmul.f32 %v1433_v62, %v604_v61 }
 0x19e   : > { %v618_v1 = vmul.f32 %v1435_v5, %v604_v61  ;;  %v622_v4 = vmul.f32 %v1437_v21, %v604_v61  ;;  %v626_v20 = vmul.f32 %v1439_v60, %v604_v61  ;;  %v630_v30 = vmul.f32 %v1441_v40, %v604_v61 }
 0x19f   : > { %v2336_v22 = vadd.f32 %v1856_v22, %v605_v6   ;;  %v2339_v54 = vadd.f32 %v1852_v54, %v607_v2   ;;  %v609_v33 = vmul.f32 0.06666667, %v607_v2  ;;  %v2342_v56 = vadd.f32 %v1848_v56, %v610_v7  }
 0x1a0   : > { %v612_v38 = vmul.f32 0.13333334, %v610_v7  ;;  %v2345_v46 = vadd.f32 %v1844_v46, %v614_v0   ;;  %v616_v31 = vmul.f32 0.2, %v614_v0  ;;  %v2348_v55 = vadd.f32 %v1840_v55, %v618_v1  }
 0x1a1   : > { %v2587_v25 = vmov %v2336_v22  ;;  %v2588_v19 = vmov %v2339_v54  ;;  %v2589_v37 = vmov %v2342_v56  ;;  %v2351_v44 = vadd.f32 %v1836_v44, %v622_v4  }
 0x1a2   : > { %v2590_v58 = vmov %v2345_v46  ;;  %v2591_v8 = vmov %v2348_v55  ;;  %v2354_v27 = vadd.f32 %v1832_v27, %v626_v20   ;;  %v613_v22 = vadd.f32 %v612_v38, %v609_v33 }
 0x1a3   : > { %v2592_v62 = vmov %v2351_v44  ;;  %v620_v54 = vmul.f32 0.26666668, %v618_v1  ;;  %v2357_v12 = vadd.f32 %v1828_v12, %v630_v30   ;;  %v624_v56 = vmul.f32 0.33333334, %v622_v4 }
 0x1a4   : > { %v2593_v5 = vmov %v2354_v27  ;;  %v634_v60 = vmul.f32 %v1443_v45, %v604_v61  ;;  %v638_v18 = vmul.f32 %v1445_v28, %v604_v61  ;;  %v617_v40 = vadd.f32 %v616_v31, %v613_v22 }
 0x1a5   : > { %v2594_v21 = vmov %v2357_v12  ;;  %v628_v46 = vmul.f32 0.4, %v626_v20  ;;  %v642_v35 = vmul.f32 %v1447_v17, %v604_v61  ;;  %v646_v42 = vmul.f32 %v1449_v15, %v604_v61 }
 0x1a6   : > { %v2360_v24 = vadd.f32 %v1824_v24, %v634_v60   ;;  %v2363_v52 = vadd.f32 %v1820_v52, %v638_v18   ;;  %v650_v44 = vmul.f32 %v1451_v23, %v604_v61  ;;  %v654_v27 = vmul.f32 %v1453_v29, %v604_v61 }
 0x1a7   : > { %v621_v55 = vadd.f32 %v620_v54, %v617_v40  ;;  %v2366_v53 = vadd.f32 %v1816_v53, %v642_v35   ;;  %v2369_v26 = vadd.f32 %v1812_v26, %v646_v42   ;;  %v658_v12 = vmul.f32 %v1455_v57, %v604_v61 }
 0x1a8   : > { %v2595_v48 = vmov %v2360_v24  ;;  %v2596_v3 = vmov %v2363_v52  ;;  %v2372_v51 = vadd.f32 %v1808_v51, %v650_v44   ;;  %v2375_v14 = vadd.f32 %v1804_v14, %v654_v27  }
 0x1a9   : > { %v2597_v36 = vmov %v2366_v53  ;;  %v2598_v45 = vmov %v2369_v26  ;;  %v625_v24 = vadd.f32 %v624_v56, %v621_v55  ;;  %v632_v16 = vmul.f32 0.46666667, %v630_v30 }
 0x1aa   : > { %v2599_v28 = vmov %v2372_v51  ;;  %v2600_v17 = vmov %v2375_v14  ;;  %v2378_v50 = vadd.f32 %v1800_v50, %v658_v12   ;;  %v662_v52 = vmul.f32 %v1457_v10, %v604_v61 }
 0x1ab   : > { %v629_v47 = vadd.f32 %v628_v46, %v625_v24  ;;  %v636_v23 = vmul.f32 0.53333336, %v634_v60  ;;  %v640_v53 = vmul.f32 0.6, %v638_v18  ;;  %v644_v51 = vmul.f32 0.6666667, %v642_v35 }
 0x1ac   : > { %v2601_v15 = vmov %v2378_v50  ;;  %v2381_v41 = vadd.f32 %v1796_v41, %v662_v52   ;;  %v648_v14 = vmul.f32 0.73333335, %v646_v42  ;;  %v652_v34 = vmul.f32 0.8, %v650_v44 }
 0x1ad   : > { %v633_v26 = vadd.f32 %v632_v16, %v629_v47  ;;  %v656_v39 = vmul.f32 0.8666667, %v654_v27  ;;  %v660_v10 = vmul.f32 0.93333334, %v658_v12  ;;  %v2611_v24 = vmov %v2595_v48 }
 0x1ae   : > { %v2602_v11 = vmov %v2381_v41  ;;  %v2612_v12 = vmov %v2594_v21  ;;  %v2613_v27 = vmov %v2593_v5  ;;  %v2614_v44 = vmov %v2592_v62 }
 0x1af   : > { %v637_v29 = vadd.f32 %v636_v23, %v633_v26  ;;  %v2608_v26 = vmov %v2598_v45  ;;  %v2615_v55 = vmov %v2591_v8  ;;  %v2616_v46 = vmov %v2590_v58 }
 0x1b0   : > { %v2617_v56 = vmov %v2589_v37  ;;  %v2618_v54 = vmov %v2588_v19  ;;  %v2619_v22 = vmov %v2587_v25  ;;  %v683_v2 = vrot.slane (%p2389_p3), %v2588_v19, 4 }
 0x1b1   : > { %v641_v13 = vadd.f32 %v640_v53, %v637_v29  ;;  %v2609_v53 = vmov %v2597_v36  ;;  %v695_v7 = vrot.slane (%p2389_p3), %v2589_v37, 4  ;;  %v707_v0 = vrot.slane (%p2389_p3), %v2590_v58, 4 }
 0x1b2   :  { %v719_v1 = vrot.slane (%p2389_p3), %v2591_v8, 4  ;;  %v731_v4 = vrot.slane (%p2389_p3), %v2592_v62, 4  ;;  %v743_v20 = vrot.slane (%p2389_p3), %v2593_v5, 4  ;;  %v755_v30 = vrot.slane (%p2389_p3), %v2594_v21, 4 }
 0x1b3   : > { %v645_v57 = vadd.f32 %v644_v51, %v641_v13  ;;  %v2607_v51 = vmov %v2599_v28  ;;  %v684_v38 = vadd.f32 (%p2389_p3), %v683_v2, %v2588_v19  ;;  %v696_v31 = vadd.f32 (%p2389_p3), %v695_v7, %v2589_v37 }
 0x1b4   :  { %v708_v22 = vadd.f32 (%p2389_p3), %v707_v0, %v2590_v58  ;;  %v720_v54 = vadd.f32 (%p2389_p3), %v719_v1, %v2591_v8  ;;  %v732_v56 = vadd.f32 (%p2389_p3), %v731_v4, %v2592_v62  ;;  %v744_v60 = vadd.f32 (%p2389_p3), %v743_v20, %v2593_v5 }
 0x1b5   : > { %v649_v63 = vadd.f32 %v648_v14, %v645_v57  ;;  %v2606_v14 = vmov %v2600_v17  ;;  %v756_v18 = vadd.f32 (%p2389_p3), %v755_v30, %v2594_v21  ;;  %v685_v46 = vrot.slane (%p2389_p3), %v684_v38, 2 }
 0x1b6   :  { %v697_v35 = vrot.slane (%p2389_p3), %v696_v31, 2  ;;  %v709_v42 = vrot.slane (%p2389_p3), %v708_v22, 2  ;;  %v721_v44 = vrot.slane (%p2389_p3), %v720_v54, 2  ;;  %v745_v27 = vrot.slane (%p2389_p3), %v744_v60, 2 }
 0x1b7   : > { %v653_v50 = vadd.f32 %v652_v34, %v649_v63  ;;  %v757_v19 = vrot.slane (%p2389_p3), %v756_v18, 2  ;;  %v686_v37 = vadd.f32 (%p2389_p3), %v685_v46, %v684_v38  ;;  %v767_v38 = vrot.slane (%p2389_p3), %v2595_v48, 4 }
 0x1b8   :  { %v698_v12 = vadd.f32 (%p2389_p3), %v697_v35, %v696_v31  ;;  %v710_v58 = vadd.f32 (%p2389_p3), %v709_v42, %v708_v22  ;;  %v722_v24 = vadd.f32 (%p2389_p3), %v721_v44, %v720_v54  ;;  %v746_v16 = vadd.f32 (%p2389_p3), %v745_v27, %v744_v60 }
 0x1b9   : > { %v657_v9 = vadd.f32 %v656_v39, %v653_v50  ;;  %v2605_v50 = vmov %v2601_v15  ;;  %v758_v62 = vadd.f32 (%p2389_p3), %v757_v19, %v756_v18  ;;  %v687_v5 = vrot.slane (%p2389_p3), %v686_v37, 1 }
 0x1ba   :  { %v699_v47 = vrot.slane (%p2389_p3), %v698_v12, 1  ;;  %v711_v21 = vrot.slane (%p2389_p3), %v710_v58, 1  ;;  %v723_v23 = vrot.slane (%p2389_p3), %v722_v24, 1  ;;  %v747_v53 = vrot.slane (%p2389_p3), %v746_v16, 1 }
 0x1bb   : > { %v661_v43 = vadd.f32 %v660_v10, %v657_v9  ;;  %v759_v29 = vrot.slane (%p2389_p3), %v758_v62, 1  ;;  %v688_v13 = vadd.f32 (%p2389_p3), %v687_v5, %v686_v37  ;;  %v779_v31 = vrot.slane (%p2389_p3), %v2596_v3, 4 }
 0x1bc   :  { %v700_v14 = vadd.f32 (%p2389_p3), %v699_v47, %v698_v12  ;;  %v712_v57 = vadd.f32 (%p2389_p3), %v711_v21, %v710_v58  ;;  %v724_v34 = vadd.f32 (%p2389_p3), %v723_v23, %v722_v24  ;;  %v748_v39 = vadd.f32 (%p2389_p3), %v747_v53, %v746_v16 }
 0x1bd   : > { %v664_v61 = vadd.f32 %v662_v52, %v661_v43  ;;  %v2610_v52 = vmov %v2596_v3  ;;  %476 = sbr.rel (!%p2389_p3) target bundleno = 334 (0x14e), region = 81  ;;  %v760_v50 = vadd.f32 (%p2389_p3), %v759_v29, %v758_v62  ;;  %v2463_v9 = vmul.f32 (%p2389_p3), 6.1035156e-05, %v688_v13 }
 0x1be   :  { %v2465_v43 = vmul.f32 (%p2389_p3), 6.1035156e-05, %v700_v14  ;;  %v791_v22 = vrot.slane (%p2389_p3), %v2597_v36, 4  ;;  %v803_v54 = vrot.slane (%p2389_p3), %v2598_v45, 4  ;;  %v815_v60 = vrot.slane (%p2389_p3), %v2599_v28, 4 }
 0x1bf   : > { %v666_v6 = vmul.f32 %v665_v59, %v664_v61  ;;  %v2467_v59 = vmul.f32 (%p2389_p3), 6.1035156e-05, %v712_v57  ;;  %v2469_v61 = vmul.f32 (%p2389_p3), 6.1035156e-05, %v724_v34  ;;  %v690_v7 = vadd.f32 (%p2389_p3), 1e-06, %v2463_v9 }
 0x1c0   :  { %v702_v0 = vadd.f32 (%p2389_p3), 1e-06, %v2465_v43  ;;  %v827_v18 = vrot.slane (%p2389_p3), %v2600_v17, 4  ;;  %v792_v46 = vadd.f32 (%p2389_p3), %v791_v22, %v2597_v36  ;;  %v804_v35 = vadd.f32 (%p2389_p3), %v803_v54, %v2598_v45 }
 0x1c1   : > { %v667_v41 = vadd.f32 %v666_v6, %v501_v32  ;;  %v671_v32 = vrot.slane (%p2389_p3), %v2587_v25, 4  ;;  %v714_v1 = vadd.f32 (%p2389_p3), 1e-06, %v2467_v59  ;;  %v726_v4 = vadd.f32 (%p2389_p3), 1e-06, %v2469_v61 }
 0x1c2   :  { %v816_v44 = vadd.f32 (%p2389_p3), %v815_v60, %v2599_v28  ;;  %v805_v19 = vrot.slane (%p2389_p3), %v804_v35, 2  ;;  %v851_v23 = vrot.slane (%p2389_p3), %v2602_v11, 4 }
 0x1c3   : > { %670 = vst [vmem:[%s669_s19 + $0x8] sm:$0xff] %v667_v41  ;;  %v2604_v41 = vmov %v2602_v11  ;;  %v672_v33 = vadd.f32 (%p2389_p3), %v671_v32, %v2587_v25  ;;  %v733_v25 = vrot.slane (%p2389_p3), %v732_v56, 2  ;;  %v2475_v32 = vmul.f32 (%p2389_p3), 6.1035156e-05, %v760_v50 }
 0x1c4   :  { %v2473_v41 = vmul.f32 6.1035156e-05, %v748_v39  ;;  %v817_v37 = vrot.slane %v816_v44, 2  ;;  %v806_v24 = vadd.f32 %v805_v19, %v804_v35 }
 0x1c5   :  { %v673_v40 = vrot.slane %v672_v33, 2  ;;  %v734_v8 = vadd.f32 %v733_v25, %v732_v56  ;;  %v768_v56 = vadd.f32 %v767_v38, %v2595_v48  ;;  %v828_v25 = vadd.f32 %v827_v18, %v2600_v17 }
 0x1c6   :  { %v750_v30 = vadd.f32 1e-06, %v2473_v41  ;;  %v793_v48 = vrot.slane %v792_v46, 2  ;;  %v818_v45 = vadd.f32 %v817_v37, %v816_v44  ;;  %v807_v28 = vrot.slane %v806_v24, 1 }
 0x1c7   :  { %v674_v55 = vadd.f32 %v673_v40, %v672_v33  ;;  %v735_v26 = vrot.slane %v734_v8, 1  ;;  %v762_v33 = vadd.f32 1e-06, %v2475_v32  ;;  %v780_v40 = vadd.f32 %v779_v31, %v2596_v3 }
 0x1c8   :  { %v769_v42 = vrot.slane %v768_v56, 2  ;;  %v829_v12 = vrot.slane %v828_v25, 2  ;;  %v794_v3 = vadd.f32 %v793_v48, %v792_v46  ;;  %v839_v17 = vrot.slane %v2601_v15, 4 }
 0x1c9   :  { %v675_v52 = vrot.slane %v674_v55, 1  ;;  %v736_v63 = vadd.f32 %v735_v26, %v734_v8  ;;  %v781_v27 = vrot.slane %v780_v40, 2  ;;  %v819_v47 = vrot.slane %v818_v45, 1 }
 0x1ca   :  { %v830_v8 = vadd.f32 %v829_v12, %v828_v25  ;;  %v795_v62 = vrot.slane %v794_v3, 1  ;;  %v808_v13 = vadd.f32 %v807_v28, %v806_v24  ;;  %v840_v46 = vadd.f32 %v839_v17, %v2601_v15 }
 0x1cb   :  { %v676_v51 = vadd.f32 %v675_v52, %v674_v55  ;;  %v2471_v6 = vmul.f32 6.1035156e-05, %v736_v63  ;;  %v770_v55 = vadd.f32 %v769_v42, %v768_v56  ;;  %v782_v58 = vadd.f32 %v781_v27, %v780_v40 }
 0x1cc   :  { %v831_v21 = vrot.slane %v830_v8, 1  ;;  %v820_v63 = vadd.f32 %v819_v47, %v818_v45  ;;  %v2506_v38 = vmul.f32 6.1035156e-05, %v808_v13  ;;  %v852_v15 = vadd.f32 %v851_v23, %v2602_v11 }
 0x1cd   :  { %v2461_v10 = vmul.f32 6.1035156e-05, %v676_v51  ;;  %v738_v20 = vadd.f32 1e-06, %v2471_v6  ;;  %v771_v36 = vrot.slane %v770_v55, 1  ;;  %v783_v16 = vrot.slane %v782_v58, 1 }
 0x1ce   :  { %v796_v51 = vadd.f32 %v795_v62, %v794_v3  ;;  %v832_v39 = vadd.f32 %v831_v21, %v830_v8  ;;  %v821_v27 = vmul.f32 6.1035156e-05, %v820_v63  ;;  %v853_v24 = vrot.slane %v852_v15, 2 }
 0x1cf   :  { %v678_v2 = vadd.f32 1e-06, %v2461_v10  ;;  %v772_v5 = vadd.f32 %v771_v36, %v770_v55  ;;  %v784_v29 = vadd.f32 %v783_v16, %v782_v58  ;;  %v841_v55 = vrot.slane %v840_v46, 2 }
 0x1d0   :  { %v833_v48 = vmul.f32 6.1035156e-05, %v832_v39  ;;  %v854_v8 = vadd.f32 %v853_v24, %v852_v15 }
 0x1d1   :  { %1460 = vlog2.f32 %v678_v2  ;;  %v2499_v34 = vmul.f32 6.1035156e-05, %v772_v5  ;;  %v842_v3 = vadd.f32 %v841_v55, %v840_v46 }
 0x1d2   :  { %1462 = vlog2.f32 %v690_v7  ;;  %v834_v58 = vadd.f32 1e-06, %v833_v48  ;;  %v855_v17 = vrot.slane %v854_v8, 1 }
 0x1d3   :  { %1464 = vlog2.f32 %v702_v0  ;;  %v785_v0 = vmul.f32 6.1035156e-05, %v784_v29  ;;  %v843_v45 = vrot.slane %v842_v3, 1 }
 0x1d4   :  { %1466 = vlog2.f32 %v714_v1  ;;  %v2502_v1 = vmul.f32 6.1035156e-05, %v796_v51 }
 0x1d5   :  { %1468 = vlog2.f32 %v726_v4  ;;  %v786_v60 = vadd.f32 1e-06, %v785_v0  ;;  %v844_v28 = vadd.f32 %v843_v45, %v842_v3 }
 0x1d6   :  { %1470 = vlog2.f32 %v738_v20  ;;  %v798_v40 = vadd.f32 1e-06, %v2502_v1 }
 0x1d7   :  { %1472 = vlog2.f32 %v750_v30  ;;  %v845_v23 = vmul.f32 6.1035156e-05, %v844_v28 }
 0x1d8   :  { %1474 = vlog2.f32 %v762_v33  ;;  %v774_v33 = vadd.f32 1e-06, %v2499_v34 }
 0x1da   :  { %1476 = vlog2.f32 %v774_v33 }
 0x1db   :  { %v1461_v52 = vpop.eup %1460  ;;  %1478 = vlog2.f32 %v786_v60 }
 0x1dc   :  { %v1463_v26 = vpop.eup %1462  ;;  %v680_v53 = vmul.f32 0.6931472, %v1461_v52  ;;  %1480 = vlog2.f32 %v798_v40 }
 0x1dd   :  { %v1465_v14 = vpop.eup %1464  ;;  %v692_v57 = vmul.f32 0.6931472, %v1463_v26  ;;  %v856_v26 = vadd.f32 %v855_v17, %v854_v8 }
 0x1de   :  { %v1467_v50 = vpop.eup %1466  ;;  %v681_v2 = vmul.f32 %v680_v53, %v2461_v10  ;;  %v704_v7 = vmul.f32 0.6931472, %v1465_v14  ;;  %v846_v14 = vadd.f32 1e-06, %v845_v23 }
 0x1df   :  { %v1469_v4 = vpop.eup %1468  ;;  %v693_v20 = vmul.f32 %v692_v57, %v2463_v9  ;;  %v716_v30 = vmul.f32 0.6931472, %v1467_v50  ;;  %v857_v57 = vmul.f32 6.1035156e-05, %v856_v26 }
 0x1e0   :  { %v1471_v31 = vpop.eup %1470  ;;  %v682_v22 = vadd.f32 %v681_v2, %v2232_v49  ;;  %v705_v54 = vmul.f32 %v704_v7, %v2465_v43  ;;  %v728_v56 = vmul.f32 0.6931472, %v1469_v4  ;;  %v810_v49 = vadd.f32 1e-06, %v2506_v38 }
 0x1e1   :  { %v1473_v10 = vpop.eup %1472  ;;  %v740_v18 = vmul.f32 0.6931472, %v1471_v31  ;;  %v717_v35 = vmul.f32 %v716_v30, %v2467_v59  ;;  %v822_v59 = vadd.f32 1e-06, %v821_v27  ;;  %v858_v50 = vadd.f32 1e-06, %v857_v57 }
 0x1e2   :  { %v694_v9 = vadd.f32 %v693_v20, %v682_v22  ;;  %v1475_v42 = vpop.eup %1474  ;;  %v729_v44 = vmul.f32 %v728_v56, %v2469_v61  ;;  %v752_v25 = vmul.f32 0.6931472, %v1473_v10  ;;  %1482 = vlog2.f32 %v810_v49 }
 0x1e3   :  { %v741_v19 = vmul.f32 %v740_v18, %v2471_v6  ;;  %v764_v12 = vmul.f32 0.6931472, %v1475_v42  ;;  %1484 = vlog2.f32 %v822_v59 }
 0x1e4   :  { %v706_v43 = vadd.f32 %v705_v54, %v694_v9  ;;  %v753_v36 = vmul.f32 %v752_v25, %v2473_v41  ;;  %1486 = vlog2.f32 %v834_v58  ;;  %v1477_v62 = vpop.eup %1476 }
 0x1e5   :  { %v765_v6 = vmul.f32 %v764_v12, %v2475_v32  ;;  %v1479_v11 = vpop.eup %1478  ;;  %v776_v5 = vmul.f32 0.6931472, %v1477_v62  ;;  %1488 = vlog2.f32 %v846_v14 }
 0x1e6   :  { %v718_v37 = vadd.f32 %v717_v35, %v706_v43  ;;  %v1481_v47 = vpop.eup %1480  ;;  %v788_v21 = vmul.f32 0.6931472, %v1479_v11  ;;  %1490 = vlog2.f32 %v858_v50 }
 0x1e7   :  { %v777_v41 = vmul.f32 %v776_v5, %v2499_v34  ;;  %v800_v29 = vmul.f32 0.6931472, %v1481_v47 }
 0x1e8   :  { %v730_v61 = vadd.f32 %v729_v44, %v718_v37  ;;  %v789_v13 = vmul.f32 %v788_v21, %v785_v0 }
 0x1e9   :  { %v801_v32 = vmul.f32 %v800_v29, %v2502_v1 }
 0x1ea   :  { %v742_v16 = vadd.f32 %v741_v19, %v730_v61 }
 0x1ec   :  { %v754_v52 = vadd.f32 %v753_v36, %v742_v16  ;;  %v1483_v51 = vpop.eup %1482 }
 0x1ed   :  { %v812_v39 = vmul.f32 0.6931472, %v1483_v51  ;;  %v1485_v2 = vpop.eup %1484 }
 0x1ee   :  { %v766_v53 = vadd.f32 %v765_v6, %v754_v52  ;;  %v1487_v20 = vpop.eup %1486  ;;  %v824_v30 = vmul.f32 0.6931472, %v1485_v2 }
 0x1ef   :  { %v813_v4 = vmul.f32 %v812_v39, %v2506_v38  ;;  %v836_v34 = vmul.f32 0.6931472, %v1487_v20  ;;  %v1489_v56 = vpop.eup %1488 }
 0x1f0   :  { %v778_v63 = vadd.f32 %v777_v41, %v766_v53  ;;  %v825_v31 = vmul.f32 %v824_v30, %v821_v27  ;;  %v848_v10 = vmul.f32 0.6931472, %v1489_v56  ;;  %v1491_v1 = vpop.eup %1490 }
 0x1f1   :  { %v837_v54 = vmul.f32 %v836_v34, %v833_v48  ;;  %v860_v40 = vmul.f32 0.6931472, %v1491_v1 }
 0x1f2   :  { %v790_v7 = vadd.f32 %v789_v13, %v778_v63  ;;  %v849_v18 = vmul.f32 %v848_v10, %v845_v23 }
 0x1f3   :  { %v861_v9 = vmul.f32 %v860_v40, %v857_v57 }
 0x1f4   :  { %v802_v33 = vadd.f32 %v801_v32, %v790_v7 }
 0x1f6   :  { %v814_v22 = vadd.f32 %v813_v4, %v802_v33 }
 0x1f8   :  { %v826_v0 = vadd.f32 %v825_v31, %v814_v22 }
 0x1fa   :  { %v838_v60 = vadd.f32 %v837_v54, %v826_v0 }
 0x1fc   :  { %v850_v46 = vadd.f32 %v849_v18, %v838_v60 }
 0x1fe   :  { %v862_v35 = vadd.f32 %v861_v9, %v850_v46 }
 0x200   :  { %v864_v38 = vsel %vm863_vm0, %v862_v35, 0.0 }
 0x201   :  { %865 = vadd.xlane.f32.xlu0 %v864_v38 }
 0x202   :  { %1547 = shalt.err (!%p1544_p8)
}
 0x203   :  { %s1548_s25 = scalar_lea.hbm %s2552_s3, 4096 }
 0x204   :  { %p1549_p9 = scmp.ne.s32.totalorder %s2552_s3, %s1548_s25  ;;  %p1552_p10 = scmp.lt.u32.totalorder %s1548_s25, %s2552_s3 }
 0x206   :  { %p1554_p11 = pnand %p1552_p10, %p1549_p9 }
 0x208   :  { %1557 = shalt.err (!%p1554_p11)
}
 0x209   :  { %889 = dma.vmem_to_hbm [thread:$0]  %s884_s22, 4096, %s2552_s3, [#allocation4], %s1865_s12, %s1865_s12, %s1866_s13  }
 0x20a   :  { %s1868_s5 = smov [#allocation10]  }
 0x20b   :  { %s896_s6 = sshll.u32 %s1868_s5, 4  ;;  %s897_s6 = int_to_ptr.vmem [resolvable:$true] %s896_s6 }
 0x20c   :  { %s1558_s9 = scalar_lea.vmem %s897_s6, 128  ;;  %p1563_p13 = scmp.lt.s32.totalorder %s897_s6, %s897_s6 }
 0x20d   :  { %p1559_p12 = scmp.ne.s32.totalorder %s897_s6, %s1558_s9  ;;  %p1564_p0 = scmp.lt.s32.totalorder %s1558_s9, %s1558_s9 }
 0x20f   :  { %p1565_p1 = por %p1564_p0, %p1563_p13 }
 0x211   :  { %p1566_p2 = pnand %p1565_p1, %p1559_p12 }
 0x28e   :  { %v866_v42 = vpop.xlane.xlu0 %865 }
 0x28f   :  { %v867_v44 = vrot.slane %v866_v42, 4 }
 0x291   :  { %v868_v49 = vadd.f32 %v867_v44, %v866_v42 }
 0x293   :  { %v869_v43 = vrot.slane %v868_v49, 2 }
 0x295   :  { %v870_v25 = vadd.f32 %v869_v43, %v868_v49 }
 0x297   :  { %v871_v27 = vrot.slane %v870_v25, 1 }
 0x299   :  { %v872_v48 = vadd.f32 %v871_v27, %v870_v25 }
 0x29b   :  { %1075 = vpush %v872_v48 }
 0x2cc   :  { %s1076_s7 = spop %1075 }
 0x2cd   :  { %s874_s8 = ssub.f32 0.0, %s1076_s7 }
 0x2cf   :  { %v875_v19 = vstv %s874_s8 }
 0x2d0   :  { %877 = vst [vmem:[#allocation10] sm:$0xff] %v875_v19 }
 0x2d1   :  { %1569 = shalt.err (!%p1566_p2)
}
 0x2d2   :  { %s1570_s13 = scalar_lea.hbm %s2553_s4, 128 }
 0x2d3   :  { %p1571_p3 = scmp.ne.s32.totalorder %s2553_s4, %s1570_s13  ;;  %p1574_p4 = scmp.lt.u32.totalorder %s1570_s13, %s2553_s4 }
 0x2d5   :  { %p1576_p5 = pnand %p1574_p4, %p1571_p3 }
 0x2d7   :  { %1579 = shalt.err (!%p1576_p5)
}
 0x2d8   :  { %899 = dma.vmem_to_hbm [thread:$0]  %s897_s6, 128, %s2553_s4, [#allocation11]  }
 0x2d9   :  { %1722 = dma.done.wait [#allocation4], 4096  }
 0x2da   :  { %1723 = vsyncadd [#allocation4], 4294963200 }
 0x2db   :  { %1724 = dma.done.wait [#allocation11], 128  }
 0x2dc   :  { %1725 = vsyncadd [#allocation11], 4294967168 }
 0x2dd   :  { %906 = vsyncpa [#allocation3], 1 }
 0x2de   :  { %907 = vsyncpa [#allocation4], 1 }
 0x2df   :  { %908 = vsyncpa [#allocation11], 1 }
 0x2e0   :  { %909 = vsyncpa [#allocation5], 1 }
 0x2e1   :  { %910 = vsyncpa [#allocation6], 1 }

</bundles_post_ra>
